<compile_context>
chip_gen: v7x
topology: tpu7x:2x2x1
jax: 0.10.0
libtpu: 0.0.40
codegen_flags: <defaults>
</compile_context>

<pallas_src>
import functools

import jax
import jax.numpy as jnp
from jax import lax
from jax.experimental import pallas as pl
from jax.experimental.pallas import tpu as pltpu

RMS_EPS = 1.1920929e-07     # torch.finfo(torch.float32).eps — F.rms_norm default eps
ATTN_SCALE = 0.12           # scale= passed to flex_attention in the reference


def _rms_norm(x):
    # F.rms_norm(x, (x.size(-1),)) with no weight; works on 2-D and 3-D slabs.
    return x * lax.rsqrt(jnp.mean(x * x, axis=-1, keepdims=True) + RMS_EPS)


def _block_kernel(blk_lam_ref, attn_lam_ref,
                  x_ref, x0_ref, ve_ref,
                  wq_ref, wk_ref, wv_ref, attn_proj_ref,
                  cos_ref, sin_ref,
                  fc_w_ref, mlp_proj_ref,
                  out_ref, *, num_heads, head_dim):
    T, D = x_ref.shape
    H = num_heads
    half = head_dim // 2
    bf16 = jnp.bfloat16

    # ---- Block residual mix (f32): x = lam0*x + lam1*x0 ----
    x = blk_lam_ref[0] * x_ref[...] + blk_lam_ref[1] * x0_ref[...]

    # ---- Attention branch on norm(x) ----
    xn = _rms_norm(x)
    xn_b = jnp.broadcast_to(xn.astype(bf16)[None], (H, T, D))   # (H, T, D) bf16

    # Head-batched QKV projections: (H,T,D) x (H,D,hd) -> (H,T,hd), f32 accumulate.
    bmm_ndh = (((2,), (1,)), ((0,), (0,)))
    q = lax.dot_general(xn_b, wq_ref[...], bmm_ndh, preferred_element_type=jnp.float32)
    k = lax.dot_general(xn_b, wk_ref[...], bmm_ndh, preferred_element_type=jnp.float32)
    v = lax.dot_general(xn_b, wv_ref[...], bmm_ndh, preferred_element_type=jnp.float32)

    # Per-head RMS norm of q/k, batched over all heads at once (f32).
    q = _rms_norm(q)
    k = _rms_norm(k)

    # Value mix once on the whole (H, T, hd) slab.
    v = attn_lam_ref[0] * v + attn_lam_ref[1] * ve_ref[...]

    # Rotary once per q/k slab; cos/sin full-width tables with sign baked in.
    cos = cos_ref[...][None]        # (1, T, head_dim)
    sin = sin_ref[...][None]

    def rotary(u):                  # u: (H, T, head_dim)
        # half_swap: [u1|u2] -> [u2|u1] along the lane axis.
        # TODO(synk): at lane-aligned head_dim (>=128) use pltpu.roll here instead.
        swapped = jnp.concatenate([u[..., half:], u[..., :half]], axis=-1)
        return u * cos + swapped * sin

    q = rotary(q)
    k = rotary(k)

    # Causal mask, hoisted (built once).
    # TODO(synk): flex_attention BlockMask is opaque; a standard causal mask is assumed.
    row = lax.broadcasted_iota(jnp.int32, (T, T), 0)
    col = lax.broadcasted_iota(jnp.int32, (T, T), 1)
    causal = row >= col

    # Scores for all heads in one batched matmul: (H,T,hd) x (H,T,hd) -> (H,T,T).
    s = lax.dot_general(q.astype(bf16), k.astype(bf16),
                        (((2,), (2,)), ((0,), (0,))),
                        preferred_element_type=jnp.float32) * ATTN_SCALE
    s = jnp.where(causal[None], s, -1e30)          # mask fill stays f32
    s = s - jnp.max(s, axis=-1, keepdims=True)
    p = jnp.exp(s)
    p = p * pl.reciprocal(jnp.sum(p, axis=-1, keepdims=True), approx=True)

    # (H,T,T) x (H,T,hd) -> (H,T,hd)
    y = lax.dot_general(p.astype(bf16), v.astype(bf16),
                        (((2,), (1,)), ((0,), (0,))),
                        preferred_element_type=jnp.float32)

    # Output projection, head-batched: (H,T,hd) x (H,hd,D) -> (H,T,D); sum heads.
    yo = lax.dot_general(y.astype(bf16), attn_proj_ref[...],
                         (((2,), (1,)), ((0,), (0,))),
                         preferred_element_type=jnp.float32)
    x = x + jnp.sum(yo, axis=0)

    # ---- MLP branch on norm(x): relu(x W1)^2 W2 ----
    xn2 = _rms_norm(x)
    hidden = jnp.dot(xn2.astype(bf16), fc_w_ref[...],
                     preferred_element_type=jnp.float32)
    hidden = jnp.square(jnp.maximum(hidden, 0.0))
    m = jnp.dot(hidden.astype(bf16), mlp_proj_ref[...],
                preferred_element_type=jnp.float32)

    out_ref[...] = x + m


def block_forward(x, ve, x0, params):
    """x, ve, x0: (1, T, D) float32. Returns (1, T, D) float32."""
    B, T, D = x.shape
    assert B == 1, "Must use batch size = 1 (matches FlexAttention constraint)"
    H = params["num_heads"]
    hd = D // H

    # ---- Wrapper-side layout prep (plain JAX, outside the kernel) ----
    # qkv_w is [in=D, out=3D] with out columns ordered q-heads | k-heads | v-heads.
    qkv_w = params["qkv_w"]
    w3 = qkv_w.reshape(D, 3, H, hd).transpose(1, 2, 0, 3)          # (3, H, D, hd)
    wq3 = w3[0].astype(jnp.bfloat16)                               # (H, D, hd)
    wk3 = w3[1].astype(jnp.bfloat16)
    wv3 = w3[2].astype(jnp.bfloat16)
    attn_proj_w3 = params["attn_proj_w"].reshape(H, hd, D).astype(jnp.bfloat16)  # (H, hd, D)
    fc_w = params["fc_w"].astype(jnp.bfloat16)                     # (D, 4D)
    mlp_proj_w = params["mlp_proj_w"].astype(jnp.bfloat16)         # (4D, D)

    cos = params["rot_cos"]                                        # (T, hd//2)
    sin = params["rot_sin"]
    cos_full = jnp.concatenate([cos, cos], axis=-1)                # (T, hd)
    sin_full = jnp.concatenate([sin, -sin], axis=-1)               # (T, hd), sign baked

    ve_heads = ve[0].reshape(T, H, hd).transpose(1, 0, 2)          # (H, T, hd) f32

    kernel = functools.partial(_block_kernel, num_heads=H, head_dim=hd)
    smem = pl.BlockSpec(memory_space=pltpu.MemorySpace.SMEM)
    vmem = pl.BlockSpec(memory_space=pltpu.MemorySpace.VMEM)

    out2d = pl.pallas_call(
        kernel,
        out_shape=jax.ShapeDtypeStruct((T, D), jnp.float32),
        in_specs=[smem, smem] + [vmem] * 11,
        out_specs=vmem,
        # At these toy sizes VMEM use is tiny; keep an explicit (default-sized)
        # budget so scaling up is a conscious decision (v7x has only 64 MiB).
        compiler_params=pltpu.CompilerParams(vmem_limit_bytes=32 * 1024 * 1024),
    )(params["block_lambdas"], params["attn_lambdas"],
      x[0], x0[0], ve_heads,
      wq3, wk3, wv3, attn_proj_w3,
      cos_full, sin_full,
      fc_w, mlp_proj_w)
    return out2d[None]


def block_reference(x, ve, x0, params):
    """Pure-JAX f32 reference mirroring the PyTorch module semantics."""
    B, T, D = x.shape
    H = params["num_heads"]
    hd = D // H
    bl = params["block_lambdas"]
    al = params["attn_lambdas"]

    xb = bl[0] * x + bl[1] * x0
    xn = _rms_norm(xb)
    qkv = (xn @ params["qkv_w"]).reshape(B, T, 3 * H, hd)
    q, k, v = qkv[:, :, :H], qkv[:, :, H:2 * H], qkv[:, :, 2 * H:]
    q, k = _rms_norm(q), _rms_norm(k)

    cos = params["rot_cos"][None, :, None, :]
    sin = params["rot_sin"][None, :, None, :]

    def rot(u):
        u1, u2 = u[..., :hd // 2], u[..., hd // 2:]
        return jnp.concatenate([u1 * cos + u2 * sin, -u1 * sin + u2 * cos], axis=-1)

    q, k = rot(q), rot(k)
    v = al[0] * v + al[1] * ve.reshape(B, T, H, hd)

    s = jnp.einsum("bthd,bshd->bhts", q, k) * ATTN_SCALE
    mask = jnp.tril(jnp.ones((T, T), dtype=bool))
    s = jnp.where(mask[None, None], s, -1e30)
    p = jax.nn.softmax(s, axis=-1)
    y = jnp.einsum("bhts,bshd->bthd", p, v).reshape(B, T, D)
    y = y @ params["attn_proj_w"]
    xb = xb + y

    xn2 = _rms_norm(xb)
    hidden = jnp.square(jnp.maximum(xn2 @ params["fc_w"], 0.0))
    return xb + hidden @ params["mlp_proj_w"]


if __name__ == "__main__":
    dim, num_heads, seq_len = 32, 4, 16
    head_dim = dim // num_heads

    key = jax.random.PRNGKey(0)
    kx, kv, k0, kq, kp, kf, km = jax.random.split(key, 7)

    # Deterministic parameter init (shapes from __init__). NOTE: the reference
    # zero-inits both c_proj weights; we use small nonzero values so the
    # attention / MLP paths are actually exercised numerically.
    bound = (3.0 ** 0.5) * 0.5 * dim ** (-0.5)
    qkv_w = jax.random.uniform(kq, (dim, 3 * dim), jnp.float32, -bound, bound)      # [in, out]
    attn_proj_w = 0.02 * jax.random.normal(kp, (dim, dim), jnp.float32)              # [in, out]
    fc_w = jax.random.uniform(kf, (dim, 4 * dim), jnp.float32, -bound, bound)        # [in, out]
    mlp_proj_w = 0.02 * jax.random.normal(km, (4 * dim, dim), jnp.float32)           # [in, out]
    block_lambdas = jnp.array([0.8, 0.2], jnp.float32)   # ref init [1.0, 0.0]; nontrivial to exercise x0 path
    attn_lambdas = jnp.array([0.5, 0.5], jnp.float32)    # matches reference init

    # Rotary tables (head_dim//4 nonzero freqs + head_dim//4 zeros -> head_dim//2 entries)
    nfreq = head_dim // 4
    ang = (1.0 / 1024.0) ** jnp.linspace(0.0, 1.0, nfreq)
    ang = jnp.concatenate([ang.astype(jnp.float32), jnp.zeros((nfreq,), jnp.float32)])
    t = jnp.arange(seq_len, dtype=jnp.float32)
    theta = t[:, None] * ang[None, :]
    rot_cos = jnp.cos(theta)
    rot_sin = jnp.sin(theta)

    params = dict(
        num_heads=num_heads,
        block_lambdas=block_lambdas,
        attn_lambdas=attn_lambdas,
        qkv_w=qkv_w,
        attn_proj_w=attn_proj_w,
        fc_w=fc_w,
        mlp_proj_w=mlp_proj_w,
        rot_cos=rot_cos,
        rot_sin=rot_sin,
    )

    x = jax.random.normal(kx, (1, seq_len, dim), jnp.float32)
    ve = jax.random.normal(kv, (1, seq_len, dim), jnp.float32)
    x0 = jax.random.normal(k0, (1, seq_len, dim), jnp.float32)

    out = block_forward(x, ve, x0, params)
    out = jax.block_until_ready(out)

    ref = block_reference(x, ve, x0, params)
    assert out.shape == (1, seq_len, dim)
    # Kernel uses bf16 MXU operands (f32 accumulate) + approx softmax reciprocal,
    # so compare against the pure-f32 reference with a correspondingly looser tol.
    assert jnp.allclose(out, ref, atol=2e-2, rtol=2e-2), (
        f"max abs diff {jnp.max(jnp.abs(out - ref))}")

    print("KERNEL_OK")
</pallas_src>

<mosaic_0001>
module attributes {stable_mosaic.version = 11 : i64} {
  func.func @_block_kernel(%arg0: memref<2xf32, #tpu.memory_space<smem>>, %arg1: memref<2xf32, #tpu.memory_space<smem>>, %arg2: memref<16x32xf32, #tpu.memory_space<vmem>>, %arg3: memref<16x32xf32, #tpu.memory_space<vmem>>, %arg4: memref<4x16x8xf32, #tpu.memory_space<vmem>>, %arg5: memref<4x32x8xbf16, #tpu.memory_space<vmem>>, %arg6: memref<4x32x8xbf16, #tpu.memory_space<vmem>>, %arg7: memref<4x32x8xbf16, #tpu.memory_space<vmem>>, %arg8: memref<4x8x32xbf16, #tpu.memory_space<vmem>>, %arg9: memref<16x8xf32, #tpu.memory_space<vmem>>, %arg10: memref<16x8xf32, #tpu.memory_space<vmem>>, %arg11: memref<32x128xbf16, #tpu.memory_space<vmem>>, %arg12: memref<128x32xbf16, #tpu.memory_space<vmem>>, %arg13: memref<16x32xf32, #tpu.memory_space<vmem>>) attributes {dimension_semantics = [], scalar_prefetch = 0 : i64, scratch_operands = 0 : i64, tpu.core_type = #tpu.core_type<tc>} {
    %c0 = arith.constant 0 : index
    %0 = memref.load %arg0[%c0] : memref<2xf32, #tpu.memory_space<smem>>
    %c0_0 = arith.constant 0 : index
    %c0_1 = arith.constant 0 : index
    %1 = vector.load %arg2[%c0_0, %c0_1] : memref<16x32xf32, #tpu.memory_space<vmem>>, vector<16x32xf32>
    %2 = vector.broadcast %0 : f32 to vector<16x32xf32>
    %3 = arith.mulf %2, %1 : vector<16x32xf32>
    %c1 = arith.constant 1 : index
    %4 = memref.load %arg0[%c1] : memref<2xf32, #tpu.memory_space<smem>>
    %c0_2 = arith.constant 0 : index
    %c0_3 = arith.constant 0 : index
    %5 = vector.load %arg3[%c0_2, %c0_3] : memref<16x32xf32, #tpu.memory_space<vmem>>, vector<16x32xf32>
    %6 = vector.broadcast %4 : f32 to vector<16x32xf32>
    %7 = arith.mulf %6, %5 : vector<16x32xf32>
    %8 = arith.addf %3, %7 : vector<16x32xf32>
    %9 = arith.mulf %8, %8 : vector<16x32xf32>
    %cst = arith.constant dense<0.000000e+00> : vector<16xf32>
    %10 = vector.multi_reduction <add>, %9, %cst [1] : vector<16x32xf32> to vector<16xf32>
    %11 = vector.shape_cast %10 : vector<16xf32> to vector<16x1xf32>
    %cst_4 = arith.constant 3.200000e+01 : f32
    %12 = vector.broadcast %cst_4 : f32 to vector<16x1xf32>
    %13 = arith.divf %11, %12 : vector<16x1xf32>
    %cst_5 = arith.constant 1.1920929E-7 : f32
    %14 = vector.broadcast %cst_5 : f32 to vector<16x1xf32>
    %15 = arith.addf %13, %14 : vector<16x1xf32>
    %16 = math.rsqrt %15 : vector<16x1xf32>
    %17 = vector.broadcast %16 : vector<16x1xf32> to vector<16x32xf32>
    %18 = arith.mulf %8, %17 : vector<16x32xf32>
    %19 = arith.truncf %18 : vector<16x32xf32> to vector<16x32xbf16>
    %20 = vector.shape_cast %19 : vector<16x32xbf16> to vector<1x16x32xbf16>
    %21 = vector.shape_cast %20 : vector<1x16x32xbf16> to vector<1x16x32xbf16>
    %22 = vector.broadcast %21 : vector<1x16x32xbf16> to vector<4x16x32xbf16>
    %c0_6 = arith.constant 0 : index
    %c0_7 = arith.constant 0 : index
    %c0_8 = arith.constant 0 : index
    %23 = vector.load %arg5[%c0_6, %c0_7, %c0_8] : memref<4x32x8xbf16, #tpu.memory_space<vmem>>, vector<4x32x8xbf16>
    %cst_9 = arith.constant dense<0.000000e+00> : vector<4x16x8xf32>
    %24 = tpu.matmul %22, %23, %cst_9 {dimension_numbers = #tpu.dot_dimension_numbers<[2], [1], [1], [2], [0, 0, 0, 1, 1, 2], [0], [0]>} : vector<4x16x32xbf16>, vector<4x32x8xbf16>, vector<4x16x8xf32> -> vector<4x16x8xf32>
    %c0_10 = arith.constant 0 : index
    %c0_11 = arith.constant 0 : index
    %c0_12 = arith.constant 0 : index
    %25 = vector.load %arg6[%c0_10, %c0_11, %c0_12] : memref<4x32x8xbf16, #tpu.memory_space<vmem>>, vector<4x32x8xbf16>
    %cst_13 = arith.constant dense<0.000000e+00> : vector<4x16x8xf32>
    %26 = tpu.matmul %22, %25, %cst_13 {dimension_numbers = #tpu.dot_dimension_numbers<[2], [1], [1], [2], [0, 0, 0, 1, 1, 2], [0], [0]>} : vector<4x16x32xbf16>, vector<4x32x8xbf16>, vector<4x16x8xf32> -> vector<4x16x8xf32>
    %c0_14 = arith.constant 0 : index
    %c0_15 = arith.constant 0 : index
    %c0_16 = arith.constant 0 : index
    %27 = vector.load %arg7[%c0_14, %c0_15, %c0_16] : memref<4x32x8xbf16, #tpu.memory_space<vmem>>, vector<4x32x8xbf16>
    %cst_17 = arith.constant dense<0.000000e+00> : vector<4x16x8xf32>
    %28 = tpu.matmul %22, %27, %cst_17 {dimension_numbers = #tpu.dot_dimension_numbers<[2], [1], [1], [2], [0, 0, 0, 1, 1, 2], [0], [0]>} : vector<4x16x32xbf16>, vector<4x32x8xbf16>, vector<4x16x8xf32> -> vector<4x16x8xf32>
    %29 = arith.mulf %24, %24 : vector<4x16x8xf32>
    %cst_18 = arith.constant dense<0.000000e+00> : vector<4x16xf32>
    %30 = vector.multi_reduction <add>, %29, %cst_18 [2] : vector<4x16x8xf32> to vector<4x16xf32>
    %31 = vector.shape_cast %30 : vector<4x16xf32> to vector<4x16x1xf32>
    %cst_19 = arith.constant 8.000000e+00 : f32
    %32 = vector.broadcast %cst_19 : f32 to vector<4x16x1xf32>
    %33 = arith.divf %31, %32 : vector<4x16x1xf32>
    %cst_20 = arith.constant 1.1920929E-7 : f32
    %34 = vector.broadcast %cst_20 : f32 to vector<4x16x1xf32>
    %35 = arith.addf %33, %34 : vector<4x16x1xf32>
    %36 = math.rsqrt %35 : vector<4x16x1xf32>
    %37 = vector.broadcast %36 : vector<4x16x1xf32> to vector<4x16x8xf32>
    %38 = arith.mulf %24, %37 : vector<4x16x8xf32>
    %39 = arith.mulf %26, %26 : vector<4x16x8xf32>
    %cst_21 = arith.constant dense<0.000000e+00> : vector<4x16xf32>
    %40 = vector.multi_reduction <add>, %39, %cst_21 [2] : vector<4x16x8xf32> to vector<4x16xf32>
    %41 = vector.shape_cast %40 : vector<4x16xf32> to vector<4x16x1xf32>
    %cst_22 = arith.constant 8.000000e+00 : f32
    %42 = vector.broadcast %cst_22 : f32 to vector<4x16x1xf32>
    %43 = arith.divf %41, %42 : vector<4x16x1xf32>
    %cst_23 = arith.constant 1.1920929E-7 : f32
    %44 = vector.broadcast %cst_23 : f32 to vector<4x16x1xf32>
    %45 = arith.addf %43, %44 : vector<4x16x1xf32>
    %46 = math.rsqrt %45 : vector<4x16x1xf32>
    %47 = vector.broadcast %46 : vector<4x16x1xf32> to vector<4x16x8xf32>
    %48 = arith.mulf %26, %47 : vector<4x16x8xf32>
    %c0_24 = arith.constant 0 : index
    %49 = memref.load %arg1[%c0_24] : memref<2xf32, #tpu.memory_space<smem>>
    %50 = vector.broadcast %49 : f32 to vector<4x16x8xf32>
    %51 = arith.mulf %50, %28 : vector<4x16x8xf32>
    %c1_25 = arith.constant 1 : index
    %52 = memref.load %arg1[%c1_25] : memref<2xf32, #tpu.memory_space<smem>>
    %c0_26 = arith.constant 0 : index
    %c0_27 = arith.constant 0 : index
    %c0_28 = arith.constant 0 : index
    %53 = vector.load %arg4[%c0_26, %c0_27, %c0_28] : memref<4x16x8xf32, #tpu.memory_space<vmem>>, vector<4x16x8xf32>
    %54 = vector.broadcast %52 : f32 to vector<4x16x8xf32>
    %55 = arith.mulf %54, %53 : vector<4x16x8xf32>
    %56 = arith.addf %51, %55 : vector<4x16x8xf32>
    %c0_29 = arith.constant 0 : index
    %c0_30 = arith.constant 0 : index
    %57 = vector.load %arg9[%c0_29, %c0_30] : memref<16x8xf32, #tpu.memory_space<vmem>>, vector<16x8xf32>
    %58 = vector.shape_cast %57 : vector<16x8xf32> to vector<1x16x8xf32>
    %c0_31 = arith.constant 0 : index
    %c0_32 = arith.constant 0 : index
    %59 = vector.load %arg10[%c0_31, %c0_32] : memref<16x8xf32, #tpu.memory_space<vmem>>, vector<16x8xf32>
    %60 = vector.shape_cast %59 : vector<16x8xf32> to vector<1x16x8xf32>
    %61 = vector.extract_strided_slice %38 {offsets = [0, 0, 4], sizes = [4, 16, 4], strides = [1, 1, 1]} : vector<4x16x8xf32> to vector<4x16x4xf32>
    %62 = vector.extract_strided_slice %38 {offsets = [0, 0, 0], sizes = [4, 16, 4], strides = [1, 1, 1]} : vector<4x16x8xf32> to vector<4x16x4xf32>
    %63 = tpu.concatenate %61, %62 in 2 : vector<4x16x4xf32>, vector<4x16x4xf32> -> vector<4x16x8xf32>
    %64 = vector.broadcast %58 : vector<1x16x8xf32> to vector<4x16x8xf32>
    %65 = arith.mulf %38, %64 : vector<4x16x8xf32>
    %66 = vector.broadcast %60 : vector<1x16x8xf32> to vector<4x16x8xf32>
    %67 = arith.mulf %63, %66 : vector<4x16x8xf32>
    %68 = arith.addf %65, %67 : vector<4x16x8xf32>
    %69 = vector.extract_strided_slice %48 {offsets = [0, 0, 4], sizes = [4, 16, 4], strides = [1, 1, 1]} : vector<4x16x8xf32> to vector<4x16x4xf32>
    %70 = vector.extract_strided_slice %48 {offsets = [0, 0, 0], sizes = [4, 16, 4], strides = [1, 1, 1]} : vector<4x16x8xf32> to vector<4x16x4xf32>
    %71 = tpu.concatenate %69, %70 in 2 : vector<4x16x4xf32>, vector<4x16x4xf32> -> vector<4x16x8xf32>
    %72 = vector.broadcast %58 : vector<1x16x8xf32> to vector<4x16x8xf32>
    %73 = arith.mulf %48, %72 : vector<4x16x8xf32>
    %74 = vector.broadcast %60 : vector<1x16x8xf32> to vector<4x16x8xf32>
    %75 = arith.mulf %71, %74 : vector<4x16x8xf32>
    %76 = arith.addf %73, %75 : vector<4x16x8xf32>
    %77 = tpu.iota {dimensions = array<i32: 0>} : vector<16x16xi32>
    %78 = tpu.iota {dimensions = array<i32: 1>} : vector<16x16xi32>
    %79 = arith.cmpi sge, %77, %78 : vector<16x16xi32>
    %80 = arith.truncf %68 : vector<4x16x8xf32> to vector<4x16x8xbf16>
    %81 = arith.truncf %76 : vector<4x16x8xf32> to vector<4x16x8xbf16>
    %cst_33 = arith.constant dense<0.000000e+00> : vector<4x16x16xf32>
    %82 = tpu.matmul %80, %81, %cst_33 {dimension_numbers = #tpu.dot_dimension_numbers<[2], [2], [1], [1], [0, 0, 0, 1, 1, 1], [0], [0]>} : vector<4x16x8xbf16>, vector<4x16x8xbf16>, vector<4x16x16xf32> -> vector<4x16x16xf32>
    %cst_34 = arith.constant 1.200000e-01 : f32
    %83 = vector.broadcast %cst_34 : f32 to vector<4x16x16xf32>
    %84 = arith.mulf %82, %83 : vector<4x16x16xf32>
    %85 = vector.shape_cast %79 : vector<16x16xi1> to vector<1x16x16xi1>
    %cst_35 = arith.constant -1.000000e+30 : f32
    %86 = vector.shape_cast %85 : vector<1x16x16xi1> to vector<1x16x16xi1>
    %87 = vector.broadcast %86 : vector<1x16x16xi1> to vector<4x16x16xi1>
    %88 = vector.broadcast %cst_35 : f32 to vector<4x16x16xf32>
    %89 = arith.select %87, %84, %88 : vector<4x16x16xi1>, vector<4x16x16xf32>
    %cst_36 = arith.constant dense<0xFF800000> : vector<4x16xf32>
    %90 = vector.multi_reduction <maximumf>, %89, %cst_36 [2] : vector<4x16x16xf32> to vector<4x16xf32>
    %91 = vector.shape_cast %90 : vector<4x16xf32> to vector<4x16x1xf32>
    %92 = vector.broadcast %91 : vector<4x16x1xf32> to vector<4x16x16xf32>
    %93 = arith.subf %89, %92 : vector<4x16x16xf32>
    %94 = math.exp %93 : vector<4x16x16xf32>
    %cst_37 = arith.constant dense<0.000000e+00> : vector<4x16xf32>
    %95 = vector.multi_reduction <add>, %94, %cst_37 [2] : vector<4x16x16xf32> to vector<4x16xf32>
    %96 = vector.shape_cast %95 : vector<4x16xf32> to vector<4x16x1xf32>
    %97 = tpu.reciprocal %96 {approx = true} : vector<4x16x1xf32> -> vector<4x16x1xf32>
    %98 = vector.broadcast %97 : vector<4x16x1xf32> to vector<4x16x16xf32>
    %99 = arith.mulf %94, %98 : vector<4x16x16xf32>
    %100 = arith.truncf %99 : vector<4x16x16xf32> to vector<4x16x16xbf16>
    %101 = arith.truncf %56 : vector<4x16x8xf32> to vector<4x16x8xbf16>
    %cst_38 = arith.constant dense<0.000000e+00> : vector<4x16x8xf32>
    %102 = tpu.matmul %100, %101, %cst_38 {dimension_numbers = #tpu.dot_dimension_numbers<[2], [1], [1], [2], [0, 0, 0, 1, 1, 2], [0], [0]>} : vector<4x16x16xbf16>, vector<4x16x8xbf16>, vector<4x16x8xf32> -> vector<4x16x8xf32>
    %103 = arith.truncf %102 : vector<4x16x8xf32> to vector<4x16x8xbf16>
    %c0_39 = arith.constant 0 : index
    %c0_40 = arith.constant 0 : index
    %c0_41 = arith.constant 0 : index
    %104 = vector.load %arg8[%c0_39, %c0_40, %c0_41] : memref<4x8x32xbf16, #tpu.memory_space<vmem>>, vector<4x8x32xbf16>
    %cst_42 = arith.constant dense<0.000000e+00> : vector<4x16x32xf32>
    %105 = tpu.matmul %103, %104, %cst_42 {dimension_numbers = #tpu.dot_dimension_numbers<[2], [1], [1], [2], [0, 0, 0, 1, 1, 2], [0], [0]>} : vector<4x16x8xbf16>, vector<4x8x32xbf16>, vector<4x16x32xf32> -> vector<4x16x32xf32>
    %cst_43 = arith.constant dense<0.000000e+00> : vector<16x32xf32>
    %106 = vector.multi_reduction <add>, %105, %cst_43 [0] : vector<4x16x32xf32> to vector<16x32xf32>
    %107 = arith.addf %8, %106 : vector<16x32xf32>
    %108 = arith.mulf %107, %107 : vector<16x32xf32>
    %cst_44 = arith.constant dense<0.000000e+00> : vector<16xf32>
    %109 = vector.multi_reduction <add>, %108, %cst_44 [1] : vector<16x32xf32> to vector<16xf32>
    %110 = vector.shape_cast %109 : vector<16xf32> to vector<16x1xf32>
    %cst_45 = arith.constant 3.200000e+01 : f32
    %111 = vector.broadcast %cst_45 : f32 to vector<16x1xf32>
    %112 = arith.divf %110, %111 : vector<16x1xf32>
    %cst_46 = arith.constant 1.1920929E-7 : f32
    %113 = vector.broadcast %cst_46 : f32 to vector<16x1xf32>
    %114 = arith.addf %112, %113 : vector<16x1xf32>
    %115 = math.rsqrt %114 : vector<16x1xf32>
    %116 = vector.broadcast %115 : vector<16x1xf32> to vector<16x32xf32>
    %117 = arith.mulf %107, %116 : vector<16x32xf32>
    %118 = arith.truncf %117 : vector<16x32xf32> to vector<16x32xbf16>
    %c0_47 = arith.constant 0 : index
    %c0_48 = arith.constant 0 : index
    %119 = vector.load %arg11[%c0_47, %c0_48] : memref<32x128xbf16, #tpu.memory_space<vmem>>, vector<32x128xbf16>
    %cst_49 = arith.constant dense<0.000000e+00> : vector<16x128xf32>
    %120 = tpu.matmul %118, %119, %cst_49 {dimension_numbers = #tpu.dot_dimension_numbers<[1], [0], [0], [1], [0, 0, 1, 1], [], []>} : vector<16x32xbf16>, vector<32x128xbf16>, vector<16x128xf32> -> vector<16x128xf32>
    %cst_50 = arith.constant 0.000000e+00 : f32
    %121 = vector.broadcast %cst_50 : f32 to vector<16x128xf32>
    %122 = arith.maximumf %120, %121 : vector<16x128xf32>
    %123 = arith.mulf %122, %122 : vector<16x128xf32>
    %124 = arith.truncf %123 : vector<16x128xf32> to vector<16x128xbf16>
    %c0_51 = arith.constant 0 : index
    %c0_52 = arith.constant 0 : index
    %125 = vector.load %arg12[%c0_51, %c0_52] : memref<128x32xbf16, #tpu.memory_space<vmem>>, vector<128x32xbf16>
    %cst_53 = arith.constant dense<0.000000e+00> : vector<16x32xf32>
    %126 = tpu.matmul %124, %125, %cst_53 {dimension_numbers = #tpu.dot_dimension_numbers<[1], [0], [0], [1], [0, 0, 1, 1], [], []>} : vector<16x128xbf16>, vector<128x32xbf16>, vector<16x32xf32> -> vector<16x32xf32>
    %127 = arith.addf %107, %126 : vector<16x32xf32>
    %c0_54 = arith.constant 0 : index
    %c0_55 = arith.constant 0 : index
    %128 = vector.load %arg13[%c0_54, %c0_55] : memref<16x32xf32, #tpu.memory_space<vmem>>, vector<16x32xf32>
    tpu.vector_store %arg13[%c0_54, %c0_55], %127 {strides = array<i32>} : memref<16x32xf32, #tpu.memory_space<vmem>>, vector<16x32xf32>,
    return
  }
}

</mosaic_0001>

<bundles_post_ra>
// kernel: tpu_custom_call.1
= control target key start
LH: loop header
LB: loop body
LE: loop exit
PB: predicated region body
PF: predicated region fallthrough
CT: control target
= control target key end

     0   :  { %18 = vsyncpa [#allocation4], 0  ;;  %s3347_s0 = inlined_call_operand.vmem [shape: f32[2], index: 0, kind: input, shape index: {}]   ;;  %s3348_s1 = inlined_call_operand.vmem [shape: f32[2], index: 1, kind: input, shape index: {}]   ;;  %s3349_s2 = inlined_call_operand.vmem [shape: f32[16,32], index: 2, kind: input, shape index: {}]   ;;  %s3350_s3 = inlined_call_operand.vmem [shape: f32[16,32], index: 3, kind: input, shape index: {}]   ;;  %s3351_s4 = inlined_call_operand.vmem [shape: f32[4,16,8], index: 4, kind: input, shape index: {}]   ;;  %s3352_s5 = inlined_call_operand.vmem [shape: bf16[4,32,8], index: 5, kind: input, shape index: {}]   ;;  %s3353_s6 = inlined_call_operand.vmem [shape: bf16[4,32,8], index: 6, kind: input, shape index: {}]   ;;  %s3354_s7 = inlined_call_operand.vmem [shape: bf16[4,32,8], index: 7, kind: input, shape index: {}]   ;;  %s3355_s8 = inlined_call_operand.vmem [shape: bf16[4,8,32], index: 8, kind: input, shape index: {}]   ;;  %s3356_s9 = inlined_call_operand.vmem [shape: f32[16,8], index: 9, kind: input, shape index: {}]   ;;  %s3357_s10 = inlined_call_operand.vmem [shape: f32[16,8], index: 10, kind: input, shape index: {}]   ;;  %s3358_s11 = inlined_call_operand.vmem [shape: bf16[32,128], index: 11, kind: input, shape index: {}]   ;;  %s3359_s12 = inlined_call_operand.vmem [shape: bf16[128,32], index: 12, kind: input, shape index: {}]   ;;  %s3360_s13 = inlined_call_operand.hbm [shape: f32[16,32], index: 13, kind: output, shape index: {}]  }
   0x1   :  { %19 = vsyncpa [#allocation6], 0 }
   0x2   :  { %20 = vsyncpa [#allocation3], 0  ;;  %s27_s27 = sshll.u32 %s3347_s0, 4  ;;  %s37_s30 = sshll.u32 %s3348_s1, 4  ;;  %s28_s27 = int_to_ptr.vmem [resolvable:$true] %s27_s27  ;;  %s38_s30 = int_to_ptr.vmem [resolvable:$true] %s37_s30 }
   0x3   :  { %s2500_s14 = scalar_lea.vmem %s28_s27, 16  ;;  %p2505_p1 = scmp.lt.s32.totalorder %s28_s27, %s28_s27 }
   0x4   :  { %p2501_p0 = scmp.ne.s32.totalorder %s28_s27, %s2500_s14  ;;  %p2506_p2 = scmp.lt.s32.totalorder %s2500_s14, %s2500_s14 }
   0x6   :  { %p2507_p3 = por %p2506_p2, %p2505_p1 }
   0x8   :  { %p2508_p4 = pnand %p2507_p3, %p2501_p0 }
   0xa   :  { %2511 = shalt.err (!%p2508_p4)
}
   0xb   :  { %s2552_s15 = smov [#allocation2]   ;;  %s2512_s16 = scalar_lea.vmem %s38_s30, 16 }
   0xc   :  { %30 = dma.vmem_to_smem %s28_s27, 16, %s2552_s15, [#allocation4]  }
   0xd   :  { %p2513_p5 = scmp.ne.s32.totalorder %s38_s30, %s2512_s16  ;;  %p2517_p6 = scmp.lt.s32.totalorder %s38_s30, %s38_s30 }
   0xe   :  { %p2518_p7 = scmp.lt.s32.totalorder %s2512_s16, %s2512_s16 }
  0x10   :  { %p2519_p8 = por %p2518_p7, %p2517_p6 }
  0x12   :  { %p2520_p9 = pnand %p2519_p8, %p2513_p5 }
  0x14   :  { %2523 = shalt.err (!%p2520_p9)
}
  0x15   :  { %s2553_s0 = smov [#allocation5]  }
  0x16   :  { %40 = dma.vmem_to_smem %s38_s30, 16, %s2553_s0, [#allocation6]  }
  0x17   :  { %2546 = dma.done.wait [#allocation4], 16  }
  0x18   :  { %2547 = vsyncadd [#allocation4], 4294967280 }
  0x19   :  { %2548 = dma.done.wait [#allocation6], 16  }
  0x1a   :  { %2549 = vsyncadd [#allocation6], 4294967280 }
  0x1b   :  { %69 = sfence }
  0x1c   :  { %s71_s1 = sld [smem:[#allocation2]]  ;;  %s2056_s17 = sld [smem:[#allocation2 + $0x1]]  ;;  %v72_v0 = vld [vmem:[%s3349_s2] sm:$0xff]  ;;  %v73_v2 = vld [vmem:[%s3349_s2 + $0x8] sm:$0xff]  ;;  %vm87_vm0 = vcmask 261120   ;;  %v2395_v17 = vld [vmem:[%s3352_s5 + $0x30] sm:$0xff]  }
  0x1d   :  { %v78_v1 = vld [vmem:[%s3350_s3] sm:$0xff]  ;;  %v79_v3 = vld [vmem:[%s3350_s3 + $0x8] sm:$0xff]  ;;  %v2554_v18 = vmov 0.0   ;;  %v2397_v20 = vld [vmem:[%s3352_s5 + $0x38] sm:$0xff]   ;;  %vm2555_vm1 = vmmov 0   ;;  %vm799_vm2 = vcmask 64512  }
  0x1e   :  { %v2394_v16 = vld [vmem:[%s3352_s5] sm:$0xff]   ;;  %2189 = vmatprep.subr.bf16.mxu0 %v2554_v18  ;;  %2213 = vmatprep.subr.bf16.mxu1 %v2554_v18  ;;  %v2396_v19 = vld [vmem:[%s3352_s5 + $0x8] sm:$0xff]   ;;  %v2398_v31 = vld [vmem:[%s3352_s5 + $0x10] sm:$0xff]   ;;  %s2093_s28 = sld [smem:[#allocation5 + $0x1]]  ;;  %vm1017_vm3 = vcmask 31744   ;;  %vm1361_vm5 = vcmask 130048  }
  0x1f   :  { %2190 = vmatpush3.bf16.msra.mxu0 %v2394_v16  ;;  %2214 = vmatpush3.bf16.msra.mxu1 %v2395_v17  ;;  %v2399_v32 = vld [vmem:[%s3353_s6 + $0x10] sm:$0xff]   ;;  %v2400_v34 = vld [vmem:[%s3352_s5 + $0x18] sm:$0xff]   ;;  %v2402_v36 = vld [vmem:[%s3352_s5 + $0x20] sm:$0xff]   ;;  %vm1645_vm7 = vcmask 1043456  }
  0x20   :  { %2191 = vmatprep.subr.bf16.mxu0 %v2554_v18  ;;  %2215 = vmatprep.subr.bf16.mxu1 %v2554_v18  ;;  %v2401_v35 = vld [vmem:[%s3353_s6 + $0x18] sm:$0xff]   ;;  %v2403_v37 = vld [vmem:[%s3353_s6 + $0x30] sm:$0xff]   ;;  %v2404_v38 = vld [vmem:[%s3352_s5 + $0x28] sm:$0xff]   ;;  %s2558_s5 = smov [#allocation7]  }
  0x21   :  { %2193 = vmatprep.mubr.msk.bf16.mxu0 %vm2555_vm1, %v2554_v18  ;;  %2217 = vmatprep.mubr.msk.bf16.mxu1 %vm2555_vm1, %v2554_v18  ;;  %v2405_v39 = vld [vmem:[%s3353_s6 + $0x38] sm:$0xff]   ;;  %v2406_v40 = vld [vmem:[%s3353_s6] sm:$0xff]   ;;  %v2407_v41 = vld [vmem:[%s3354_s7 + $0x10] sm:$0xff]  }
  0x22   :  { %v74_v4 = vstv %s71_s1  ;;  %v80_v5 = vstv %s2056_s17  ;;  %v2408_v42 = vld [vmem:[%s3353_s6 + $0x8] sm:$0xff]   ;;  %v2409_v43 = vld [vmem:[%s3354_s7 + $0x18] sm:$0xff]  }
  0x23   :  { %v75_v6 = vmul.f32 %v74_v4, %v72_v0  ;;  %v81_v7 = vmul.f32 %v80_v5, %v78_v1  ;;  %v76_v8 = vmul.f32 %v74_v4, %v73_v2  ;;  %v82_v9 = vmul.f32 %v80_v5, %v79_v3  ;;  %2192 = vmatpush3.bf16.msra.mxu0 %v2396_v19  ;;  %v2410_v44 = vld [vmem:[%s3353_s6 + $0x20] sm:$0xff]   ;;  %v2411_v45 = vld [vmem:[%s3354_s7 + $0x30] sm:$0xff]   ;;  %v2412_v46 = vld [vmem:[%s3353_s6 + $0x28] sm:$0xff]   ;;  %s2557_s6 = smov 4  }
  0x24   :  { %2216 = vmatpush3.bf16.msra.mxu1 %v2397_v20  ;;  %2197 = vmatprep.subr.bf16.mxu0 %v2554_v18  ;;  %v2413_v47 = vld [vmem:[%s3354_s7 + $0x38] sm:$0xff]   ;;  %v2414_v48 = vld [vmem:[%s3354_s7] sm:$0xff]   ;;  %v2415_v49 = vld [vmem:[%s3354_s7 + $0x8] sm:$0xff]  }
  0x25   :  { %v2649_v10 = vadd.f32 %v81_v7, %v75_v6  ;;  %v2651_v11 = vadd.f32 %v82_v9, %v76_v8  ;;  %2229 = vmatprep.subr.bf16.mxu1 %v2554_v18  ;;  %v2416_v50 = vld [vmem:[%s3354_s7 + $0x20] sm:$0xff]   ;;  %v2417_v51 = vld [vmem:[%s3354_s7 + $0x28] sm:$0xff]   ;;  %s921_s7 = sld [smem:[#allocation5]] }
  0x27   :  { %v85_v12 = vmul.f32 %v2649_v10, %v2649_v10  ;;  %v86_v13 = vmul.f32 %v2651_v11, %v2651_v11 }
  0x29   :  { %v88_v14 = vsel %vm87_vm0, %v85_v12, 0.0  ;;  %v91_v15 = vsel %vm87_vm0, %v86_v13, 0.0 }
  0x2a   :  { %89 = vadd.xlane.f32.xlu0 %v88_v14 }
  0x2e   :  { %92 = vadd.xlane.f32.xlu0 %v91_v15 }
  0xb7   :  { %v90_v21 = vpop.xlane.xlu0 %89 }
  0xb8   :  { %v95_v22 = vmul.f32 0.03125, %v90_v21 }
  0xba   :  { %v97_v23 = vadd.f32 1.1920929e-07, %v95_v22 }
  0xbb   :  { %v93_v24 = vpop.xlane.xlu0 %92 }
  0xbc   :  { %v96_v25 = vmul.f32 0.03125, %v93_v24  ;;  %2428 = vrsqrt.f32 %v97_v23 }
  0xbe   :  { %v98_v26 = vadd.f32 1.1920929e-07, %v96_v25 }
  0xc0   :  { %2430 = vrsqrt.f32 %v98_v26 }
  0xc6   :  { %v2429_v27 = vpop.eup %2428 }
  0xc7   :  { %v101_v29 = vmul.f32 %v2429_v27, %v2649_v10  ;;  %v2855_v27 = vstv %s921_s7 }
  0xca   :  { %v2431_v28 = vpop.eup %2430 }
  0xcb   :  { %v102_v30 = vmul.f32 %v2431_v28, %v2651_v11  ;;  %v934_v28 = vld [vmem:[%s3351_s4 + $0x10] sm:$0xff] }
  0xcd   :  { %v2689_v33 = vpack.c.bf16 %v102_v30, %v101_v29  ;;  %v2860_v29 = vstv %s2093_s28  ;;  %v935_v30 = vld [vmem:[%s3351_s4 + $0x18] sm:$0xff] }
  0xcf   :  { %2194 = vmatmul.mubr.msk.bf16.vlgmr.msra.gmra.mrb[0].mxu0 %vm87_vm0, %v2689_v33  ;;  %2218 = vmatmul.mubr.msk.bf16.vlgmr.msra.gmra.mrb[0].mxu1 %vm87_vm0, %v2689_v33 }
  0xd0   :  { %2198 = vmatpush3.bf16.msra.mxu0 %v2398_v31  ;;  %2230 = vmatpush3.bf16.msra.mxu1 %v2399_v32 }
  0xd1   :  { %2199 = vmatprep.subr.bf16.mxu0 %v2554_v18  ;;  %2231 = vmatprep.subr.bf16.mxu1 %v2554_v18 }
  0xd2   :  { %2201 = vmatprep.mubr.msk.bf16.mxu0 %vm2555_vm1, %v2554_v18  ;;  %2233 = vmatprep.mubr.msk.bf16.mxu1 %vm2555_vm1, %v2554_v18 }
  0xd4   :  { %2200 = vmatpush3.bf16.msra.mxu0 %v2400_v34  ;;  %2232 = vmatpush3.bf16.msra.mxu1 %v2401_v35  ;;  %v943_v35 = vmul.f32 %v2860_v29, %v934_v28 }
  0xd5   :  { %2205 = vmatprep.subr.bf16.mxu0 %v2554_v18  ;;  %2245 = vmatprep.subr.bf16.mxu1 %v2554_v18 }
  0xd7   :  { %2202 = vmatmul.mubr.msk.bf16.vlgmr.msra.gmra.mrb[4].mxu0 %vm87_vm0, %v2689_v33  ;;  %2234 = vmatmul.mubr.msk.bf16.vlgmr.msra.gmra.mrb[4].mxu1 %vm87_vm0, %v2689_v33 }
  0xd8   :  { %2206 = vmatpush3.bf16.msra.mxu0 %v2402_v36  ;;  %2246 = vmatpush3.bf16.msra.mxu1 %v2403_v37 }
  0xd9   :  { %2207 = vmatprep.subr.bf16.mxu0 %v2554_v18  ;;  %2247 = vmatprep.subr.bf16.mxu1 %v2554_v18 }
  0xda   :  { %2209 = vmatprep.mubr.msk.bf16.mxu0 %vm2555_vm1, %v2554_v18  ;;  %2249 = vmatprep.mubr.msk.bf16.mxu1 %vm2555_vm1, %v2554_v18 }
  0xdc   :  { %2208 = vmatpush3.bf16.msra.mxu0 %v2404_v38  ;;  %2248 = vmatpush3.bf16.msra.mxu1 %v2405_v39  ;;  %v944_v38 = vmul.f32 %v2860_v29, %v935_v30 }
  0xdd   :  { %2221 = vmatprep.subr.bf16.mxu0 %v2554_v18  ;;  %2261 = vmatprep.subr.bf16.mxu1 %v2554_v18 }
  0xdf   :  { %2210 = vmatmul.mubr.msk.bf16.vlgmr.msra.gmra.mrb[8].mxu0 %vm87_vm0, %v2689_v33  ;;  %2250 = vmatmul.mubr.msk.bf16.vlgmr.msra.gmra.mrb[8].mxu1 %vm87_vm0, %v2689_v33 }
  0xe0   :  { %2222 = vmatpush3.bf16.msra.mxu0 %v2406_v40  ;;  %2262 = vmatpush3.bf16.msra.mxu1 %v2407_v41 }
  0xe1   :  { %2223 = vmatprep.subr.bf16.mxu0 %v2554_v18  ;;  %2263 = vmatprep.subr.bf16.mxu1 %v2554_v18 }
  0xe2   :  { %2225 = vmatprep.mubr.msk.bf16.mxu0 %vm2555_vm1, %v2554_v18  ;;  %2265 = vmatprep.mubr.msk.bf16.mxu1 %vm2555_vm1, %v2554_v18 }
  0xe4   :  { %2224 = vmatpush3.bf16.msra.mxu0 %v2408_v42  ;;  %2264 = vmatpush3.bf16.msra.mxu1 %v2409_v43 }
  0xe5   :  { %2237 = vmatprep.subr.bf16.mxu0 %v2554_v18  ;;  %2277 = vmatprep.subr.bf16.mxu1 %v2554_v18 }
  0xe7   :  { %2226 = vmatmul.mubr.msk.bf16.vlgmr.msra.gmra.mrb[12].mxu0 %vm87_vm0, %v2689_v33  ;;  %2266 = vmatmul.mubr.msk.bf16.vlgmr.msra.gmra.mrb[12].mxu1 %vm87_vm0, %v2689_v33 }
  0xe8   :  { %2238 = vmatpush3.bf16.msra.mxu0 %v2410_v44  ;;  %2278 = vmatpush3.bf16.msra.mxu1 %v2411_v45 }
  0xe9   :  { %2239 = vmatprep.subr.bf16.mxu0 %v2554_v18  ;;  %2279 = vmatprep.subr.bf16.mxu1 %v2554_v18 }
  0xea   :  { %2241 = vmatprep.mubr.msk.bf16.mxu0 %vm2555_vm1, %v2554_v18  ;;  %2281 = vmatprep.mubr.msk.bf16.mxu1 %vm2555_vm1, %v2554_v18 }
  0xec   :  { %2240 = vmatpush3.bf16.msra.mxu0 %v2412_v46  ;;  %2280 = vmatpush3.bf16.msra.mxu1 %v2413_v47  ;;  %v938_v46 = vld [vmem:[%s3351_s4 + $0x30] sm:$0xff] }
  0xed   :  { %2253 = vmatprep.subr.bf16.mxu0 %v2554_v18  ;;  %2291 = vmatprep.subr.bf16.mxu1 %v2554_v18 }
  0xef   :  { %2242 = vmatmul.mubr.msk.bf16.vlgmr.msra.gmra.mrb[16].mxu0 %vm87_vm0, %v2689_v33  ;;  %2282 = vmatmul.mubr.msk.bf16.vlgmr.msra.gmra.mrb[16].mxu1 %vm87_vm0, %v2689_v33 }
  0xf0   :  { %2254 = vmatpush3.bf16.msra.mxu0 %v2414_v48  ;;  %2257 = vmatprep.mubr.msk.bf16.mxu0 %vm2555_vm1, %v2554_v18 }
  0xf1   :  { %2255 = vmatprep.subr.bf16.mxu0 %v2554_v18  ;;  %2293 = vmatprep.mubr.msk.bf16.mxu1 %vm2555_vm1, %v2554_v18 }
  0xf4   :  { %2256 = vmatpush3.bf16.msra.mxu0 %v2415_v49  ;;  %v939_v49 = vld [vmem:[%s3351_s4 + $0x38] sm:$0xff] }
  0xf5   :  { %2269 = vmatprep.subr.bf16.mxu0 %v2554_v18 }
  0xf7   :  { %2258 = vmatmul.mubr.msk.bf16.vlgmr.msra.gmra.mrb[20].mxu0 %vm87_vm0, %v2689_v33 }
  0xf8   :  { %2270 = vmatpush3.bf16.msra.mxu0 %v2416_v50  ;;  %2273 = vmatprep.mubr.msk.bf16.mxu0 %vm2555_vm1, %v2554_v18 }
  0xf9   :  { %2271 = vmatprep.subr.bf16.mxu0 %v2554_v18 }
  0xfc   :  { %2272 = vmatpush3.bf16.msra.mxu0 %v2417_v51 }
  0xfd   :  { %2285 = vmatprep.subr.bf16.mxu0 %v2554_v18 }
  0xff   :  { %2274 = vmatmul.mubr.msk.bf16.vlgmr.msra.gmra.mrb[24].mxu0 %vm87_vm0, %v2689_v33 }
 0x100   :  { %2287 = vmatprep.mubr.msk.bf16.mxu0 %vm2555_vm1, %v2554_v18 }
 0x1a2   :  { %v2813_v52 = vpop.f32.mrb[0].mxu0  ;;  %v2815_v53 = vpop.f32.mrb[0].mxu1 }
 0x1a3   :  { %v791_v54 = vmul.f32 %v2813_v52, %v2813_v52  ;;  %v2195_v55 = vpop.f32.mrb[1].mxu0  ;;  %v2219_v56 = vpop.f32.mrb[1].mxu1 }
 0x1a4   :  { %v2819_v57 = vpop.f32.mrb[2].mxu0  ;;  %v2821_v58 = vpop.f32.mrb[2].mxu1 }
 0x1a5   :  { %v2196_v59 = vpop.f32.mrb[3].mxu0  ;;  %v2220_v60 = vpop.f32.mrb[3].mxu1  ;;  %v800_v61 = vsel %vm799_vm2, %v791_v54, 0.0  ;;  %v792_v62 = vmul.f32 %v2819_v57, %v2819_v57  ;;  %v947_v54 = vmul.f32 %v2860_v29, %v938_v46  ;;  %v936_v46 = vld [vmem:[%s3351_s4 + $0x20] sm:$0xff] }
 0x1a6   :  { %801 = vadd.xlane.f32.xlu0 %v800_v61 }
 0x1a7   :  { %v803_v63 = vsel %vm799_vm2, %v792_v62, 0.0 }
 0x1a8   :  { %804 = vadd.xlane.f32.xlu1 %v803_v63 }
 0x1aa   :  { %v2827_v0 = vpop.f32.mrb[4].mxu0  ;;  %v2829_v1 = vpop.f32.mrb[4].mxu1 }
 0x1ab   :  { %v859_v2 = vmul.f32 %v2829_v1, %v2829_v1  ;;  %v2203_v3 = vpop.f32.mrb[5].mxu0  ;;  %v2235_v4 = vpop.f32.mrb[5].mxu1  ;;  %v793_v7 = vmul.f32 %v2827_v0, %v2827_v0 }
 0x1ac   :  { %v2833_v5 = vpop.f32.mrb[6].mxu0  ;;  %v2835_v6 = vpop.f32.mrb[6].mxu1 }
 0x1ad   :  { %v860_v8 = vmul.f32 %v2835_v6, %v2835_v6  ;;  %v2204_v9 = vpop.f32.mrb[7].mxu0  ;;  %v2236_v12 = vpop.f32.mrb[7].mxu1  ;;  %v871_v13 = vsel %vm799_vm2, %v859_v2, 0.0  ;;  %v794_v14 = vmul.f32 %v2833_v5, %v2833_v5  ;;  %v806_v16 = vsel %vm799_vm2, %v793_v7, 0.0 }
 0x1ae   :  { %872 = vadd.xlane.f32.xlu0 %v871_v13  ;;  %v948_v2 = vmul.f32 %v2860_v29, %v939_v49 }
 0x1af   :  { %v874_v15 = vsel %vm799_vm2, %v860_v8, 0.0  ;;  %v809_v22 = vsel %vm799_vm2, %v794_v14, 0.0 }
 0x1b0   :  { %875 = vadd.xlane.f32.xlu1 %v874_v15 }
 0x1b2   :  { %v2846_v17 = vpop.f32.mrb[8].mxu1  ;;  %807 = vadd.xlane.f32.xlu0 %v806_v16  ;;  %v2848_v19 = vpop.f32.mrb[8].mxu0 }
 0x1b3   :  { %v2211_v20 = vpop.f32.mrb[9].mxu0  ;;  %v2251_v21 = vpop.f32.mrb[9].mxu1  ;;  %v863_v3 = vmul.f32 %v2846_v17, %v2846_v17 }
 0x1b4   :  { %v2851_v23 = vpop.f32.mrb[10].mxu1  ;;  %810 = vadd.xlane.f32.xlu1 %v809_v22  ;;  %v2853_v24 = vpop.f32.mrb[10].mxu0  ;;  %v798_v21 = vmul.f32 %v2821_v58, %v2821_v58  ;;  %v932_v22 = vld [vmem:[%s3351_s4] sm:$0xff] }
 0x1b5   :  { %v2212_v25 = vpop.f32.mrb[11].mxu0  ;;  %v2252_v26 = vpop.f32.mrb[11].mxu1  ;;  %v864_v50 = vmul.f32 %v2851_v23, %v2851_v23  ;;  %v796_v4 = vmul.f32 %v2853_v24, %v2853_v24 }
 0x1b6   :  { %v933_v25 = vld [vmem:[%s3351_s4 + $0x8] sm:$0xff]  ;;  %v795_v26 = vmul.f32 %v2848_v19, %v2848_v19 }
 0x1b7   :  { %v886_v15 = vsel %vm799_vm2, %v864_v50, 0.0  ;;  %v815_v30 = vsel %vm799_vm2, %v796_v4, 0.0 }
 0x1ba   :  { %v2865_v31 = vpop.f32.mrb[12].mxu0  ;;  %v678_v32 = vpop.f32.mrb[12].mxu1 }
 0x1bb   :  { %v857_v33 = vmul.f32 %v2865_v31, %v2865_v31  ;;  %v925_v34 = vmul.f32 %v2855_v27, %v678_v32  ;;  %v2227_v36 = vpop.f32.mrb[13].mxu0  ;;  %v2267_v37 = vpop.f32.mrb[13].mxu1  ;;  %v883_v32 = vsel %vm799_vm2, %v863_v3, 0.0 }
 0x1bc   :  { %v2872_v39 = vpop.f32.mrb[14].mxu0  ;;  %v681_v40 = vpop.f32.mrb[14].mxu1  ;;  %v942_v37 = vmul.f32 %v2860_v29, %v933_v25 }
 0x1bd   :  { %v858_v41 = vmul.f32 %v2872_v39, %v2872_v39  ;;  %v926_v42 = vmul.f32 %v2855_v27, %v681_v40  ;;  %v2228_v43 = vpop.f32.mrb[15].mxu0  ;;  %v2268_v44 = vpop.f32.mrb[15].mxu1  ;;  %v865_v45 = vsel %vm799_vm2, %v857_v33, 0.0  ;;  %v2881_v47 = vadd.f32 %v943_v35, %v925_v34 }
 0x1be   :  { %866 = vadd.xlane.f32.xlu1 %v865_v45  ;;  %v941_v35 = vmul.f32 %v2860_v29, %v932_v22  ;;  %v821_v44 = vsel %vm799_vm2, %v798_v21, 0.0  ;;  %v812_v45 = vsel %vm799_vm2, %v795_v26, 0.0 }
 0x1bf   :  { %v2883_v48 = vadd.f32 %v944_v38, %v926_v42  ;;  %v868_v55 = vsel %vm799_vm2, %v858_v41, 0.0  ;;  %v797_v38 = vmul.f32 %v2815_v53, %v2815_v53 }
 0x1c1   :  { %v1455_v51 = vpack.c.bf16 %v2883_v48, %v2881_v47 }
 0x1c2   :  { %v784_v56 = vpop.f32.mrb[16].mxu1  ;;  %869 = vadd.xlane.f32.xlu1 %v868_v55  ;;  %v2894_v59 = vpop.f32.mrb[16].mxu0 }
 0x1c3   :  { %v929_v60 = vmul.f32 %v2855_v27, %v784_v56  ;;  %v861_v61 = vmul.f32 %v2894_v59, %v2894_v59  ;;  %v2243_v62 = vpop.f32.mrb[17].mxu0  ;;  %v2283_v63 = vpop.f32.mrb[17].mxu1  ;;  %v818_v56 = vsel %vm799_vm2, %v797_v38, 0.0 }
 0x1c4   :  { %v2904_v7 = vpop.f32.mrb[18].mxu0  ;;  %v787_v8 = vpop.f32.mrb[18].mxu1 }
 0x1c5   :  { %v2906_v9 = vadd.f32 %v947_v54, %v929_v60  ;;  %v930_v12 = vmul.f32 %v2855_v27, %v787_v8  ;;  %v2244_v13 = vpop.f32.mrb[19].mxu0  ;;  %v2284_v14 = vpop.f32.mrb[19].mxu1  ;;  %v877_v16 = vsel %vm799_vm2, %v861_v61, 0.0  ;;  %v862_v41 = vmul.f32 %v2904_v7, %v2904_v7  ;;  %v937_v54 = vld [vmem:[%s3351_s4 + $0x28] sm:$0xff]  ;;  %s2556_s4 = smov 124  }
 0x1c6   :  { %887 = vadd.xlane.f32.xlu1 %v886_v15  ;;  %878 = vadd.xlane.f32.xlu0 %v877_v16  ;;  %v945_v61 = vmul.f32 %v2860_v29, %v936_v46  ;;  %v946_v3 = vmul.f32 %v2860_v29, %v937_v54 }
 0x1c7   :  { %v2911_v20 = vadd.f32 %v948_v2, %v930_v12  ;;  %v880_v60 = vsel %vm799_vm2, %v862_v41, 0.0 }
 0x1c9   :  { %v1457_v28 = vpack.c.bf16 %v2911_v20, %v2906_v9  ;;  %v1638_v9 = vld [vmem:[%s3355_s8] sm:$0xf] }
 0x1ca   :  { %816 = vadd.xlane.f32.xlu1 %v815_v30  ;;  %884 = vadd.xlane.f32.xlu0 %v883_v32  ;;  %v625_v33 = vpop.f32.mrb[20].mxu0  ;;  %v1647_v20 = vsel %vm1645_vm7, %v1638_v9, 0 }
 0x1cb   :  { %v923_v34 = vmul.f32 %v2855_v27, %v625_v33  ;;  %v2259_v36 = vpop.f32.mrb[21].mxu0 }
 0x1cc   :  { %v628_v40 = vpop.f32.mrb[22].mxu0 }
 0x1cd   :  { %v924_v42 = vmul.f32 %v2855_v27, %v628_v40  ;;  %v2260_v43 = vpop.f32.mrb[23].mxu0  ;;  %v2940_v49 = vadd.f32 %v941_v35, %v923_v34 }
 0x1ce   :  { %822 = vadd.xlane.f32.xlu1 %v821_v44  ;;  %813 = vadd.xlane.f32.xlu0 %v812_v45 }
 0x1cf   :  { %v2942_v50 = vadd.f32 %v942_v37, %v924_v42 }
 0x1d1   :  { %v1454_v55 = vpack.c.bf16 %v2942_v50, %v2940_v49 }
 0x1d2   :  { %819 = vadd.xlane.f32.xlu0 %v818_v56  ;;  %881 = vadd.xlane.f32.xlu1 %v880_v60  ;;  %v731_v62 = vpop.f32.mrb[24].mxu0 }
 0x1d3   :  { %v927_v63 = vmul.f32 %v2855_v27, %v731_v62  ;;  %v2275_v2 = vpop.f32.mrb[25].mxu0 }
 0x1d4   :  { %v734_v4 = vpop.f32.mrb[26].mxu0 }
 0x1d5   :  { %v2954_v8 = vadd.f32 %v945_v61, %v927_v63  ;;  %v928_v12 = vmul.f32 %v2855_v27, %v734_v4  ;;  %v2276_v13 = vpop.f32.mrb[27].mxu0 }
 0x1d7   :  { %v2957_v14 = vadd.f32 %v946_v3, %v928_v12 }
 0x1d9   :  { %v1456_v15 = vpack.c.bf16 %v2957_v14, %v2954_v8 }
 0x233   :  { %v802_v16 = vpop.xlane.xlu0 %801 }
 0x234   :  { %v825_v21 = vmul.f32 0.125, %v802_v16 }
 0x235   :  { %v805_v22 = vpop.xlane.xlu1 %804 }
 0x236   :  { %v833_v25 = vadd.f32 1.1920929e-07, %v825_v21  ;;  %v826_v26 = vmul.f32 0.125, %v805_v22 }
 0x238   :  { %2432 = vrsqrt.f32 %v833_v25  ;;  %v834_v30 = vadd.f32 1.1920929e-07, %v826_v26 }
 0x23a   :  { %2434 = vrsqrt.f32 %v834_v30 }
 0x23b   :  { %v873_v29 = vpop.xlane.xlu0 %872 }
 0x23c   :  { %v891_v32 = vmul.f32 0.125, %v873_v29 }
 0x23d   :  { %v876_v33 = vpop.xlane.xlu1 %875 }
 0x23e   :  { %v899_v34 = vadd.f32 1.1920929e-07, %v891_v32  ;;  %v892_v35 = vmul.f32 0.125, %v876_v33 }
 0x23f   :  { %v808_v27 = vpop.xlane.xlu0 %807 }
 0x240   :  { %2436 = vrsqrt.f32 %v899_v34  ;;  %v900_v36 = vadd.f32 1.1920929e-07, %v892_v35  ;;  %v827_v37 = vmul.f32 0.125, %v808_v27 }
 0x241   :  { %v811_v38 = vpop.xlane.xlu1 %810 }
 0x242   :  { %v2433_v40 = vpop.eup %2432  ;;  %2438 = vrsqrt.f32 %v900_v36  ;;  %v835_v41 = vadd.f32 1.1920929e-07, %v827_v37  ;;  %v828_v42 = vmul.f32 0.125, %v811_v38 }
 0x243   :  { %v2962_v43 = vmul.f32 %v2433_v40, %v2813_v52 }
 0x244   :  { %v2435_v44 = vpop.eup %2434  ;;  %v836_v45 = vadd.f32 1.1920929e-07, %v828_v42  ;;  %2440 = vrsqrt.f32 %v835_v41 }
 0x245   :  { %969 = vrot.lane.b32.xlu0 %v2962_v43, %s2556_s4  ;;  %v2967_v46 = vmul.f32 %v2435_v44, %v2819_v57 }
 0x246   :  { %2442 = vrsqrt.f32 %v836_v45 }
 0x247   :  { %971 = vrot.lane.b32.xlu1 %v2967_v46, %s2556_s4 }
 0x249   :  { %993 = vrot.lane.b32.xlu0 %v2962_v43, %s2557_s6 }
 0x24a   :  { %v2437_v52 = vpop.eup %2436 }
 0x24b   :  { %v867_v54 = vpop.xlane.xlu1 %866  ;;  %995 = vrot.lane.b32.xlu1 %v2967_v46, %s2557_s6  ;;  %v2976_v56 = vmul.f32 %v2437_v52, %v2829_v1 }
 0x24c   :  { %v2439_v60 = vpop.eup %2438 }
 0x24d   :  { %1062 = vrot.lane.b32.xlu0 %v2976_v56, %s2556_s4  ;;  %v2981_v57 = vmul.f32 %v2439_v60, %v2835_v6 }
 0x24e   :  { %v2441_v62 = vpop.eup %2440 }
 0x24f   :  { %v870_v61 = vpop.xlane.xlu1 %869  ;;  %1064 = vrot.lane.b32.xlu1 %v2981_v57, %s2556_s4  ;;  %v2990_v1 = vmul.f32 %v2441_v62, %v2827_v0  ;;  %v889_v0 = vmul.f32 0.125, %v867_v54 }
 0x250   :  { %v2443_v63 = vpop.eup %2442  ;;  %v890_v33 = vmul.f32 0.125, %v870_v61 }
 0x251   :  { %1086 = vrot.lane.b32.xlu0 %v2976_v56, %s2557_s6  ;;  %v2995_v6 = vmul.f32 %v2443_v63, %v2833_v5  ;;  %v897_v32 = vadd.f32 1.1920929e-07, %v889_v0  ;;  %v3076_v0 = vld [vmem:[%s3357_s10] sm:$0xff] }
 0x252   :  { %v898_v27 = vadd.f32 1.1920929e-07, %v890_v33 }
 0x253   :  { %v888_v2 = vpop.xlane.xlu1 %887  ;;  %v879_v3 = vpop.xlane.xlu0 %878  ;;  %1088 = vrot.lane.b32.xlu1 %v2981_v57, %s2557_s6 }
 0x254   :  { %v896_v4 = vmul.f32 0.125, %v888_v2  ;;  %v893_v36 = vmul.f32 0.125, %v879_v3 }
 0x255   :  { %973 = vrot.lane.b32.xlu0 %v2990_v1, %s2556_s4 }
 0x256   :  { %v904_v12 = vadd.f32 1.1920929e-07, %v896_v4  ;;  %v901_v42 = vadd.f32 1.1920929e-07, %v893_v36 }
 0x257   :  { %v817_v13 = vpop.xlane.xlu1 %816  ;;  %v885_v16 = vpop.xlane.xlu0 %884  ;;  %975 = vrot.lane.b32.xlu1 %v2995_v6, %s2556_s4 }
 0x258   :  { %2444 = vrsqrt.f32 %v904_v12  ;;  %v830_v21 = vmul.f32 0.125, %v817_v13  ;;  %v895_v22 = vmul.f32 0.125, %v885_v16 }
 0x259   :  { %997 = vrot.lane.b32.xlu0 %v2990_v1, %s2557_s6 }
 0x25a   :  { %v838_v25 = vadd.f32 1.1920929e-07, %v830_v21  ;;  %v903_v26 = vadd.f32 1.1920929e-07, %v895_v22 }
 0x25b   :  { %v814_v30 = vpop.xlane.xlu0 %813  ;;  %999 = vrot.lane.b32.xlu1 %v2995_v6, %s2557_s6  ;;  %v823_v29 = vpop.xlane.xlu1 %822 }
 0x25c   :  { %v829_v5 = vmul.f32 0.125, %v814_v30  ;;  %2446 = vrsqrt.f32 %v903_v26  ;;  %v3087_v30 = vld [vmem:[%s3356_s9 + $0x8] sm:$0xff] }
 0x25d   :  { %2448 = vrsqrt.f32 %v838_v25 }
 0x25e   :  { %v837_v34 = vadd.f32 1.1920929e-07, %v829_v5  ;;  %2450 = vrsqrt.f32 %v897_v32  ;;  %v3092_v5 = vld [vmem:[%s3357_s10 + $0x8] sm:$0xff] }
 0x25f   :  { %v882_v37 = vpop.xlane.xlu1 %881  ;;  %v820_v60 = vpop.xlane.xlu0 %819 }
 0x260   :  { %2452 = vrsqrt.f32 %v837_v34  ;;  %v894_v40 = vmul.f32 0.125, %v882_v37 }
 0x261   :  { %2454 = vrsqrt.f32 %v898_v27 }
 0x262   :  { %v2445_v35 = vpop.eup %2444  ;;  %v902_v52 = vadd.f32 1.1920929e-07, %v894_v40  ;;  %2456 = vrsqrt.f32 %v901_v42 }
 0x263   :  { %v3004_v38 = vmul.f32 %v2445_v35, %v2851_v23  ;;  %v1027_v35 = vmul.f32 %v3087_v30, %v2967_v46 }
 0x264   :  { %2458 = vrsqrt.f32 %v902_v52 }
 0x265   :  { %1072 = vrot.lane.b32.xlu1 %v3004_v38, %s2556_s4 }
 0x266   :  { %v2447_v41 = vpop.eup %2446 }
 0x267   :  { %v2449_v44 = vpop.eup %2448  ;;  %v3009_v45 = vmul.f32 %v2447_v41, %v2846_v17  ;;  %v831_v17 = vmul.f32 0.125, %v820_v60 }
 0x268   :  { %v3016_v23 = vmul.f32 %v2449_v44, %v2853_v24  ;;  %v2451_v54 = vpop.eup %2450  ;;  %v832_v24 = vmul.f32 0.125, %v823_v29 }
 0x269   :  { %1096 = vrot.lane.b32.xlu1 %v3004_v38, %s2557_s6  ;;  %1070 = vrot.lane.b32.xlu0 %v3009_v45, %s2556_s4  ;;  %v3023_v62 = vmul.f32 %v2451_v54, %v2865_v31  ;;  %v839_v3 = vadd.f32 1.1920929e-07, %v831_v17 }
 0x26a   :  { %v2453_v61 = vpop.eup %2452  ;;  %v840_v31 = vadd.f32 1.1920929e-07, %v832_v24 }
 0x26b   :  { %v2455_v63 = vpop.eup %2454  ;;  %v3026_v2 = vmul.f32 %v2453_v61, %v2848_v19  ;;  %2460 = vrsqrt.f32 %v839_v3  ;;  %v1117_v61 = vmul.f32 %v3087_v30, %v2981_v57 }
 0x26c   :  { %v3033_v4 = vmul.f32 %v2455_v63, %v2872_v39  ;;  %v2457_v12 = vpop.eup %2456  ;;  %2462 = vrsqrt.f32 %v840_v31 }
 0x26d   :  { %979 = vrot.lane.b32.xlu1 %v3016_v23, %s2556_s4  ;;  %1094 = vrot.lane.b32.xlu0 %v3009_v45, %s2557_s6  ;;  %v3040_v13 = vmul.f32 %v2457_v12, %v2894_v59 }
 0x26e   :  { %v2459_v19 = vpop.eup %2458 }
 0x26f   :  { %v3047_v39 = vmul.f32 %v2459_v19, %v2904_v7 }
 0x271   :  { %1082 = vrot.lane.b32.xlu1 %v3023_v62, %s2557_s6  ;;  %977 = vrot.lane.b32.xlu0 %v3026_v2, %s2556_s4 }
 0x275   :  { %1060 = vrot.lane.b32.xlu1 %v3033_v4, %s2556_s4  ;;  %1058 = vrot.lane.b32.xlu0 %v3023_v62, %s2556_s4  ;;  %v2461_v16 = vpop.eup %2460 }
 0x276   :  { %v2463_v59 = vpop.eup %2462  ;;  %v3058_v21 = vmul.f32 %v2461_v16, %v2815_v53 }
 0x277   :  { %v3065_v7 = vmul.f32 %v2463_v59, %v2821_v58  ;;  %v3081_v58 = vld [vmem:[%s3356_s9] sm:$0xff]  ;;  %s2043_s9 = sshll.u32 %s2558_s5, 4  ;;  %s2044_s9 = int_to_ptr.vmem [resolvable:$true] %s2043_s9 }
 0x278   :  { %v1026_v34 = vmul.f32 %v3081_v58, %v2962_v43  ;;  %v1116_v46 = vmul.f32 %v3081_v58, %v2976_v56  ;;  %v1028_v57 = vmul.f32 %v3081_v58, %v2990_v1  ;;  %p2529_p11 = scmp.lt.s32.totalorder %s2044_s9, %s2044_s9 }
 0x279   :  { %1084 = vrot.lane.b32.xlu1 %v3033_v4, %s2557_s6  ;;  %1066 = vrot.lane.b32.xlu0 %v3040_v13, %s2556_s4 }
 0x27d   :  { %1068 = vrot.lane.b32.xlu1 %v3047_v39, %s2556_s4  ;;  %1090 = vrot.lane.b32.xlu0 %v3040_v13, %s2557_s6 }
 0x281   :  { %1092 = vrot.lane.b32.xlu1 %v3047_v39, %s2557_s6  ;;  %1001 = vrot.lane.b32.xlu0 %v3026_v2, %s2557_s6 }
 0x285   :  { %1003 = vrot.lane.b32.xlu1 %v3016_v23, %s2557_s6  ;;  %981 = vrot.lane.b32.xlu0 %v3058_v21, %s2556_s4 }
 0x289   :  { %983 = vrot.lane.b32.xlu1 %v3065_v7, %s2556_s4  ;;  %1005 = vrot.lane.b32.xlu0 %v3058_v21, %s2557_s6 }
 0x28d   :  { %1007 = vrot.lane.b32.xlu1 %v3065_v7, %s2557_s6 }
 0x2b7   :  { %v970_v53 = vpop.permute.xlu0 %969 }
 0x2b9   :  { %v972_v22 = vpop.permute.xlu1 %971 }
 0x2bb   :  { %v994_v25 = vpop.permute.xlu0 %993 }
 0x2bc   :  { %v1018_v26 = vsel %vm1017_vm3, %v970_v53, %v994_v25  ;;  %v1029_v25 = vmul.f32 %v3087_v30, %v2995_v6 }
 0x2bd   :  { %v1034_v29 = vmul.f32 %v1018_v26, %v3076_v0  ;;  %v996_v32 = vpop.permute.xlu1 %995 }
 0x2be   :  { %v1019_v33 = vsel %vm1017_vm3, %v972_v22, %v996_v32 }
 0x2bf   :  { %v1035_v27 = vmul.f32 %v1019_v33, %v3092_v5  ;;  %v1063_v36 = vpop.permute.xlu0 %1062  ;;  %v3101_v37 = vadd.f32 %v1034_v29, %v1026_v34 }
 0x2c1   :  { %v3103_v40 = vadd.f32 %v1035_v27, %v1027_v35  ;;  %v1065_v41 = vpop.permute.xlu1 %1064 }
 0x2c3   :  { %v1145_v42 = vpack.c.bf16 %v3103_v40, %v3101_v37  ;;  %v1087_v44 = vpop.permute.xlu0 %1086  ;;  %v1032_v40 = vmul.f32 %v3081_v58, %v3058_v21 }
 0x2c4   :  { %v1108_v52 = vsel %vm1017_vm3, %v1063_v36, %v1087_v44 }
 0x2c5   :  { %v1124_v54 = vmul.f32 %v1108_v52, %v3076_v0  ;;  %v1089_v43 = vpop.permute.xlu1 %1088  ;;  %v1121_v52 = vmul.f32 %v3087_v30, %v3004_v38 }
 0x2c6   :  { %v1109_v60 = vsel %vm1017_vm3, %v1065_v41, %v1089_v43 }
 0x2c7   :  { %v1125_v17 = vmul.f32 %v1109_v60, %v3092_v5  ;;  %v974_v63 = vpop.permute.xlu0 %973  ;;  %v1132_v24 = vadd.f32 %v1124_v54, %v1116_v46  ;;  %v1120_v54 = vmul.f32 %v3081_v58, %v3009_v45 }
 0x2c9   :  { %v1133_v3 = vadd.f32 %v1125_v17, %v1117_v61  ;;  %v976_v12 = vpop.permute.xlu1 %975 }
 0x2cb   :  { %v998_v31 = vpop.permute.xlu0 %997  ;;  %v1150_v19 = vpack.c.bf16 %v1133_v3, %v1132_v24 }
 0x2cc   :  { %v1020_v16 = vsel %vm1017_vm3, %v974_v63, %v998_v31 }
 0x2cd   :  { %v1036_v59 = vmul.f32 %v1020_v16, %v3076_v0  ;;  %v1000_v53 = vpop.permute.xlu1 %999  ;;  %v1204_v22 = vsel %vm799_vm2, %v1150_v19, 0 }
 0x2ce   :  { %v1021_v56 = vsel %vm1017_vm3, %v976_v12, %v1000_v53  ;;  %2292 = vmatpush3.bf16.xpose.msra.mxu1 %v1204_v22  ;;  %v1115_v53 = vmul.f32 %v3087_v30, %v3033_v4  ;;  %v1118_v4 = vmul.f32 %v3081_v58, %v3040_v13  ;;  %v1030_v13 = vmul.f32 %v3081_v58, %v3026_v2 }
 0x2cf   :  { %v1037_v26 = vmul.f32 %v1021_v56, %v3092_v5  ;;  %2303 = vmatprep.subr.bf16.mxu1 %v2554_v18  ;;  %v1044_v29 = vadd.f32 %v1036_v59, %v1028_v57  ;;  %v1114_v59 = vmul.f32 %v3081_v58, %v3023_v62 }
 0x2d1   :  { %v1045_v32 = vadd.f32 %v1037_v26, %v1029_v25 }
 0x2d3   :  { %v1146_v33 = vpack.c.bf16 %v1045_v32, %v1044_v29 }
 0x2d5   :  { %2294 = vmatmul.mubr.msk.bf16.vlgmr.msra.gmra.mrb[20].mxu1 %vm799_vm2, %v1146_v33 }
 0x2d6   :  { %2305 = vmatprep.mubr.msk.bf16.mxu1 %vm2555_vm1, %v2554_v18 }
 0x2d7   :  { %v1073_v34 = vpop.permute.xlu1 %1072 }
 0x2db   :  { %v1097_v35 = vpop.permute.xlu1 %1096  ;;  %v1071_v27 = vpop.permute.xlu0 %1070 }
 0x2dc   :  { %v1113_v1 = vsel %vm1017_vm3, %v1073_v34, %v1097_v35 }
 0x2dd   :  { %v1129_v6 = vmul.f32 %v1113_v1, %v3092_v5 }
 0x2df   :  { %v980_v36 = vpop.permute.xlu1 %979  ;;  %v1095_v41 = vpop.permute.xlu0 %1094  ;;  %v1137_v46 = vadd.f32 %v1129_v6, %v1121_v52  ;;  %v1119_v6 = vmul.f32 %v3087_v30, %v3047_v39 }
 0x2e0   :  { %v1112_v44 = vsel %vm1017_vm3, %v1071_v27, %v1095_v41 }
 0x2e1   :  { %v1128_v43 = vmul.f32 %v1112_v44, %v3076_v0 }
 0x2e3   :  { %v1083_v60 = vpop.permute.xlu1 %1082  ;;  %v1136_v61 = vadd.f32 %v1128_v43, %v1120_v54  ;;  %v978_v17 = vpop.permute.xlu0 %977 }
 0x2e5   :  { %v1152_v63 = vpack.c.bf16 %v1137_v46, %v1136_v61  ;;  %v1031_v61 = vmul.f32 %v3087_v30, %v3016_v23 }
 0x2e7   :  { %v1061_v24 = vpop.permute.xlu1 %1060  ;;  %v1059_v3 = vpop.permute.xlu0 %1058  ;;  %v1298_v12 = vsel %vm799_vm2, %v1152_v63, 0 }
 0x2e8   :  { %v1106_v31 = vsel %vm1017_vm3, %v1059_v3, %v1083_v60  ;;  %2304 = vmatpush3.bf16.xpose.msra.mxu1 %v1298_v12 }
 0x2e9   :  { %2315 = vmatprep.subr.bf16.mxu1 %v2554_v18  ;;  %v1122_v38 = vmul.f32 %v1106_v31, %v3076_v0 }
 0x2eb   :  { %v1085_v19 = vpop.permute.xlu1 %1084  ;;  %v1067_v45 = vpop.permute.xlu0 %1066  ;;  %v1130_v56 = vadd.f32 %v1122_v38, %v1114_v59 }
 0x2ec   :  { %v1107_v16 = vsel %vm1017_vm3, %v1061_v24, %v1085_v19 }
 0x2ed   :  { %v1123_v22 = vmul.f32 %v1107_v16, %v3092_v5 }
 0x2ef   :  { %v1131_v57 = vadd.f32 %v1123_v22, %v1115_v53  ;;  %v1069_v25 = vpop.permute.xlu1 %1068  ;;  %v1091_v26 = vpop.permute.xlu0 %1090 }
 0x2f0   :  { %v1110_v29 = vsel %vm1017_vm3, %v1067_v45, %v1091_v26 }
 0x2f1   :  { %v1149_v32 = vpack.c.bf16 %v1131_v57, %v1130_v56  ;;  %v1126_v33 = vmul.f32 %v1110_v29, %v3076_v0 }
 0x2f3   :  { %v1093_v34 = vpop.permute.xlu1 %1092  ;;  %v1157_v35 = vsel %vm799_vm2, %v1149_v32, 0  ;;  %v1002_v27 = vpop.permute.xlu0 %1001  ;;  %v1134_v44 = vadd.f32 %v1126_v33, %v1118_v4 }
 0x2f4   :  { %v1111_v62 = vsel %vm1017_vm3, %v1069_v25, %v1093_v34  ;;  %2286 = vmatpush3.bf16.xpose.msra.mxu0 %v1157_v35  ;;  %v1022_v1 = vsel %vm1017_vm3, %v978_v17, %v1002_v27 }
 0x2f5   :  { %v1127_v41 = vmul.f32 %v1111_v62, %v3092_v5  ;;  %2297 = vmatprep.subr.bf16.mxu0 %v2554_v18  ;;  %v1038_v52 = vmul.f32 %v1022_v1, %v3076_v0 }
 0x2f7   :  { %v1135_v54 = vadd.f32 %v1127_v41, %v1119_v6  ;;  %v1004_v43 = vpop.permute.xlu1 %1003  ;;  %v982_v60 = vpop.permute.xlu0 %981  ;;  %v1046_v63 = vadd.f32 %v1038_v52, %v1030_v13 }
 0x2f8   :  { %v1023_v46 = vsel %vm1017_vm3, %v980_v36, %v1004_v43 }
 0x2f9   :  { %v1039_v39 = vmul.f32 %v1023_v46, %v3092_v5  ;;  %v1151_v17 = vpack.c.bf16 %v1135_v54, %v1134_v44 }
 0x2fb   :  { %v1047_v24 = vadd.f32 %v1039_v39, %v1031_v61  ;;  %2288 = vmatmul.mubr.msk.bf16.vlgmr.msra.gmra.mrb[28].mxu0 %vm799_vm2, %v1145_v42  ;;  %v984_v3 = vpop.permute.xlu1 %983  ;;  %v1251_v12 = vsel %vm799_vm2, %v1151_v17, 0  ;;  %v1006_v36 = vpop.permute.xlu0 %1005  ;;  %v1033_v42 = vmul.f32 %v3087_v30, %v3065_v7  ;;  %v1138_v7 = vlaneseq }
 0x2fc   :  { %2298 = vmatpush3.bf16.xpose.msra.mxu0 %v1251_v12  ;;  %2299 = vmatprep.mubr.msk.bf16.mxu0 %vm2555_vm1, %v2554_v18  ;;  %v1024_v23 = vsel %vm1017_vm3, %v982_v60, %v1006_v36 }
 0x2fd   :  { %v1147_v2 = vpack.c.bf16 %v1047_v24, %v1046_v63  ;;  %2309 = vmatprep.subr.bf16.mxu0 %v2554_v18  ;;  %v1040_v31 = vmul.f32 %v1024_v23, %v3076_v0  ;;  %v1139_v58 = vshrl.u32 %v1138_v7, 7  ;;  %v1142_v30 = vand.u32 127, %v1138_v7 }
 0x2ff   :  { %v1008_v38 = vpop.permute.xlu1 %1007  ;;  %v1048_v45 = vadd.f32 %v1040_v31, %v1032_v40  ;;  %v1140_v59 = vadd.s32 8, %v1139_v58  ;;  %vm1143_vm4 = vcmp.ge.s32.totalorder %v1139_v58, %v1142_v30 }
 0x300   :  { %v1025_v37 = vsel %vm1017_vm3, %v984_v3, %v1008_v38 }
 0x301   :  { %v1041_v19 = vmul.f32 %v1025_v37, %v3092_v5  ;;  %vm1144_vm6 = vcmp.ge.s32.totalorder %v1140_v59, %v1142_v30 }
 0x303   :  { %v1049_v16 = vadd.f32 %v1041_v19, %v1033_v42  ;;  %2300 = vmatmul.mubr.msk.bf16.vlgmr.msra.gmra.mrb[32].mxu0 %vm799_vm2, %v1147_v2 }
 0x304   :  { %2310 = vmatpush3.bf16.msra.mxu0 %v1454_v55  ;;  %2311 = vmatprep.mubr.msk.bf16.mxu0 %vm2555_vm1, %v2554_v18 }
 0x305   :  { %v1148_v0 = vpack.c.bf16 %v1049_v16, %v1048_v45  ;;  %2321 = vmatprep.subr.bf16.mxu0 %v2554_v18 }
 0x307   :  { %2306 = vmatmul.mubr.msk.bf16.vlgmr.msra.gmra.mrb[24].mxu1 %vm799_vm2, %v1148_v0 }
 0x308   :  { %2316 = vmatpush3.bf16.msra.mxu1 %v1455_v51  ;;  %2317 = vmatprep.mubr.msk.bf16.mxu1 %vm2555_vm1, %v2554_v18 }
 0x309   :  { %2327 = vmatprep.subr.bf16.mxu1 %v2554_v18 }
 0x3a8   :  { %v1240_v21 = vpop.f32.mrb[20].mxu1 }
 0x3a9   :  { %v2295_v49 = vpop.f32.mrb[21].mxu1  ;;  %v1343_v53 = vmul.f32 0.12, %v1240_v21 }
 0x3aa   :  { %v1243_v50 = vpop.f32.mrb[22].mxu1 }
 0x3ab   :  { %v2296_v55 = vpop.f32.mrb[23].mxu1  ;;  %v1344_v26 = vmul.f32 0.12, %v1243_v50  ;;  %v1355_v32 = vsel %vm1143_vm4, %v1343_v53, -1e+30 }
 0x3ac   :  { %v1368_v35 = vsel %vm1361_vm5, %v1355_v32, -inf }
 0x3ad   :  { %v1356_v4 = vsel %vm1144_vm6, %v1344_v26, -1e+30 }
 0x3ae   :  { %v1371_v52 = vsel %vm1361_vm5, %v1356_v4, -inf }
 0x3ce   :  { %v1193_v5 = vpop.f32.mrb[28].mxu0 }
 0x3cf   :  { %v1341_v22 = vmul.f32 0.12, %v1193_v5  ;;  %v2289_v56 = vpop.f32.mrb[29].mxu0 }
 0x3d0   :  { %v1196_v57 = vpop.f32.mrb[30].mxu0 }
 0x3d1   :  { %v1342_v47 = vmul.f32 0.12, %v1196_v57  ;;  %v2290_v48 = vpop.f32.mrb[31].mxu0  ;;  %v1353_v51 = vsel %vm1143_vm4, %v1341_v22, -1e+30 }
 0x3d2   :  { %v1362_v25 = vsel %vm1361_vm5, %v1353_v51, -inf }
 0x3d3   :  { %1363 = vmax.xlane.f32.xlu0 %v1362_v25  ;;  %v1354_v29 = vsel %vm1144_vm6, %v1342_v47, -1e+30 }
 0x3d4   :  { %v1365_v33 = vsel %vm1361_vm5, %v1354_v29, -inf }
 0x3d5   :  { %1366 = vmax.xlane.f32.xlu1 %v1365_v33 }
 0x3d6   :  { %v1287_v34 = vpop.f32.mrb[32].mxu0 }
 0x3d7   :  { %v1345_v27 = vmul.f32 0.12, %v1287_v34  ;;  %1369 = vmax.xlane.f32.xlu0 %v1368_v35  ;;  %v2301_v62 = vpop.f32.mrb[33].mxu0 }
 0x3d8   :  { %v1290_v1 = vpop.f32.mrb[34].mxu0 }
 0x3d9   :  { %v1346_v6 = vmul.f32 0.12, %v1290_v1  ;;  %v2302_v41 = vpop.f32.mrb[35].mxu0  ;;  %v1357_v54 = vsel %vm1143_vm4, %v1345_v27, -1e+30 }
 0x3da   :  { %v1334_v44 = vpop.f32.mrb[24].mxu1  ;;  %v1374_v63 = vsel %vm1361_vm5, %v1357_v54, -inf }
 0x3db   :  { %v1347_v43 = vmul.f32 0.12, %v1334_v44  ;;  %v2307_v60 = vpop.f32.mrb[25].mxu1  ;;  %1372 = vmax.xlane.f32.xlu0 %v1371_v52  ;;  %v1358_v46 = vsel %vm1144_vm6, %v1346_v6, -1e+30 }
 0x3dc   :  { %v1337_v13 = vpop.f32.mrb[26].mxu1  ;;  %v1377_v61 = vsel %vm1361_vm5, %v1358_v46, -inf }
 0x3dd   :  { %v1348_v39 = vmul.f32 0.12, %v1337_v13  ;;  %v2308_v17 = vpop.f32.mrb[27].mxu1  ;;  %1378 = vmax.xlane.f32.xlu1 %v1377_v61  ;;  %v1359_v3 = vsel %vm1143_vm4, %v1347_v43, -1e+30 }
 0x3de   :  { %v1380_v36 = vsel %vm1361_vm5, %v1359_v3, -inf }
 0x3df   :  { %1375 = vmax.xlane.f32.xlu0 %v1374_v63  ;;  %v1360_v24 = vsel %vm1144_vm6, %v1348_v39, -1e+30 }
 0x3e0   :  { %v1383_v12 = vsel %vm1361_vm5, %v1360_v24, -inf }
 0x3e1   :  { %1384 = vmax.xlane.f32.xlu1 %v1383_v12 }
 0x3e3   :  { %1381 = vmax.xlane.f32.xlu0 %v1380_v36 }
 0x460   :  { %v1364_v2 = vpop.xlane.xlu0 %1363 }
 0x461   :  { %v1386_v23 = vsub.f32 %v1353_v51, %v1364_v2 }
 0x462   :  { %v1367_v31 = vpop.xlane.xlu1 %1366 }
 0x463   :  { %v1394_v38 = vmul.f32 1.442695, %v1386_v23  ;;  %v1387_v37 = vsub.f32 %v1354_v29, %v1367_v31 }
 0x464   :  { %v1370_v40 = vpop.xlane.xlu0 %1369 }
 0x465   :  { %2464 = vpow2.f32 %v1394_v38  ;;  %v1396_v42 = vmul.f32 1.442695, %v1387_v37  ;;  %v1388_v19 = vsub.f32 %v1355_v32, %v1370_v40 }
 0x467   :  { %2466 = vpow2.f32 %v1396_v42  ;;  %v1398_v45 = vmul.f32 1.442695, %v1388_v19 }
 0x468   :  { %v1373_v16 = vpop.xlane.xlu0 %1372 }
 0x469   :  { %2468 = vpow2.f32 %v1398_v45  ;;  %v1389_v0 = vsub.f32 %v1356_v4, %v1373_v16 }
 0x46a   :  { %v1379_v21 = vpop.xlane.xlu1 %1378 }
 0x46b   :  { %v1400_v49 = vmul.f32 1.442695, %v1389_v0  ;;  %v1391_v50 = vsub.f32 %v1358_v46, %v1379_v21 }
 0x46c   :  { %v1376_v55 = vpop.xlane.xlu0 %1375 }
 0x46d   :  { %2470 = vpow2.f32 %v1400_v49  ;;  %v1404_v7 = vmul.f32 1.442695, %v1391_v50  ;;  %v1390_v58 = vsub.f32 %v1357_v54, %v1376_v55  ;;  %v1640_v49 = vld [vmem:[%s3355_s8 + $0x8] sm:$0xf] }
 0x46e   :  { %v1385_v30 = vpop.xlane.xlu1 %1384 }
 0x46f   :  { %v2465_v5 = vpop.eup %2464  ;;  %2472 = vpow2.f32 %v1404_v7  ;;  %v1402_v59 = vmul.f32 1.442695, %v1390_v58  ;;  %v1393_v53 = vsub.f32 %v1360_v24, %v1385_v30  ;;  %v1741_v30 = vsel %vm1645_vm7, %v1640_v49, 0  ;;  %v2422_v49 = vld [vmem:[%s3359_s12 + $0x10] sm:$0xff]  }
 0x470   :  { %v1382_v22 = vpop.xlane.xlu0 %1381  ;;  %v1410_v56 = vsel %vm1361_vm5, %v2465_v5, 0.0 }
 0x471   :  { %v2467_v57 = vpop.eup %2466  ;;  %2474 = vpow2.f32 %v1402_v59  ;;  %v1408_v47 = vmul.f32 1.442695, %v1393_v53  ;;  %v1392_v48 = vsub.f32 %v1359_v3, %v1382_v22  ;;  %1411 = vadd.xlane.f32.xlu0 %v1410_v56  ;;  %v1641_v59 = vld [vmem:[%s3355_s8 + $0xc] sm:$0xf] }
 0x472   :  { %v1413_v51 = vsel %vm1361_vm5, %v2467_v57, 0.0 }
 0x473   :  { %v2469_v25 = vpop.eup %2468  ;;  %2476 = vpow2.f32 %v1408_v47  ;;  %v1406_v26 = vmul.f32 1.442695, %v1392_v48  ;;  %1414 = vadd.xlane.f32.xlu1 %v1413_v51  ;;  %v1788_v47 = vsel %vm1645_vm7, %v1641_v59, 0 }
 0x474   :  { %v1416_v29 = vsel %vm1361_vm5, %v2469_v25, 0.0 }
 0x475   :  { %2478 = vpow2.f32 %v1406_v26  ;;  %1417 = vadd.xlane.f32.xlu0 %v1416_v29 }
 0x477   :  { %v2471_v32 = vpop.eup %2470 }
 0x478   :  { %v1419_v33 = vsel %vm1361_vm5, %v2471_v32, 0.0 }
 0x479   :  { %v2473_v34 = vpop.eup %2472  ;;  %1420 = vadd.xlane.f32.xlu1 %v1419_v33 }
 0x47a   :  { %v1425_v62 = vsel %vm1361_vm5, %v2473_v34, 0.0 }
 0x47b   :  { %v2475_v35 = vpop.eup %2474 }
 0x47c   :  { %v1422_v27 = vsel %vm1361_vm5, %v2475_v35, 0.0 }
 0x47d   :  { %v2477_v4 = vpop.eup %2476  ;;  %1423 = vadd.xlane.f32.xlu0 %v1422_v27  ;;  %1426 = vadd.xlane.f32.xlu1 %v1425_v62 }
 0x47e   :  { %v1431_v41 = vsel %vm1361_vm5, %v2477_v4, 0.0 }
 0x47f   :  { %v2479_v1 = vpop.eup %2478 }
 0x480   :  { %v1428_v6 = vsel %vm1361_vm5, %v2479_v1, 0.0 }
 0x481   :  { %1429 = vadd.xlane.f32.xlu0 %v1428_v6  ;;  %1432 = vadd.xlane.f32.xlu1 %v1431_v41 }
 0x4fe   :  { %v1412_v44 = vpop.xlane.xlu0 %1411 }
 0x4ff   :  { %2480 = vrcp.f32 %v1412_v44 }
 0x500   :  { %v1415_v52 = vpop.xlane.xlu1 %1414 }
 0x501   :  { %2482 = vrcp.f32 %v1415_v52 }
 0x502   :  { %v1418_v54 = vpop.xlane.xlu0 %1417 }
 0x503   :  { %2484 = vrcp.f32 %v1418_v54 }
 0x506   :  { %v1421_v43 = vpop.xlane.xlu1 %1420 }
 0x507   :  { %2486 = vrcp.f32 %v1421_v43 }
 0x509   :  { %v2481_v60 = vpop.eup %2480 }
 0x50a   :  { %v1424_v46 = vpop.xlane.xlu0 %1423  ;;  %v1427_v13 = vpop.xlane.xlu1 %1426  ;;  %v1442_v39 = vmul.f32 %v2481_v60, %v2465_v5 }
 0x50b   :  { %v2483_v61 = vpop.eup %2482  ;;  %2488 = vrcp.f32 %v1424_v46 }
 0x50c   :  { %v1443_v17 = vmul.f32 %v2483_v61, %v2467_v57  ;;  %2490 = vrcp.f32 %v1427_v13 }
 0x50d   :  { %v2485_v12 = vpop.eup %2484 }
 0x50e   :  { %v1430_v63 = vpop.xlane.xlu0 %1429  ;;  %v1433_v24 = vpop.xlane.xlu1 %1432  ;;  %v1450_v3 = vpack.c.bf16 %v1443_v17, %v1442_v39  ;;  %v1444_v2 = vmul.f32 %v2485_v12, %v2469_v25 }
 0x50f   :  { %2492 = vrcp.f32 %v1430_v63 }
 0x510   :  { %2494 = vrcp.f32 %v1433_v24  ;;  %2312 = vmatmul.mubr.msk.bf16.vlgmr.msra.gmra.mrb[36].mxu0 %vm1361_vm5, %v1450_v3 }
 0x511   :  { %v2487_v36 = vpop.eup %2486  ;;  %2322 = vmatpush3.bf16.msra.mxu0 %v1456_v15  ;;  %2323 = vmatprep.mubr.msk.bf16.mxu0 %vm2555_vm1, %v2554_v18 }
 0x512   :  { %v1445_v23 = vmul.f32 %v2487_v36, %v2471_v32  ;;  %2333 = vmatprep.subr.bf16.mxu0 %v2554_v18 }
 0x514   :  { %v1451_v31 = vpack.c.bf16 %v1445_v23, %v1444_v2 }
 0x515   :  { %v2489_v38 = vpop.eup %2488 }
 0x516   :  { %v2491_v37 = vpop.eup %2490  ;;  %v1446_v40 = vmul.f32 %v2489_v38, %v2475_v35  ;;  %2318 = vmatmul.mubr.msk.bf16.vlgmr.msra.gmra.mrb[28].mxu1 %vm1361_vm5, %v1451_v31 }
 0x517   :  { %v1447_v42 = vmul.f32 %v2491_v37, %v2473_v34  ;;  %2328 = vmatpush3.bf16.msra.mxu1 %v1457_v28  ;;  %2329 = vmatprep.mubr.msk.bf16.mxu1 %vm2555_vm1, %v2554_v18  ;;  %v1639_v28 = vld [vmem:[%s3355_s8 + $0x4] sm:$0xf] }
 0x518   :  { %2339 = vmatprep.subr.bf16.mxu1 %v2554_v18  ;;  %v1694_v0 = vsel %vm1645_vm7, %v1639_v28, 0 }
 0x519   :  { %v2493_v8 = vpop.eup %2492  ;;  %v1452_v14 = vpack.c.bf16 %v1447_v42, %v1446_v40 }
 0x51a   :  { %v2495_v15 = vpop.eup %2494  ;;  %v1448_v19 = vmul.f32 %v2493_v8, %v2479_v1 }
 0x51b   :  { %v1449_v45 = vmul.f32 %v2495_v15, %v2477_v4  ;;  %2324 = vmatmul.mubr.msk.bf16.vlgmr.msra.gmra.mrb[40].mxu0 %vm1361_vm5, %v1452_v14 }
 0x51c   :  { %2335 = vmatprep.mubr.msk.bf16.mxu0 %vm2555_vm1, %v2554_v18  ;;  %2334 = vmatpush3.bf16.msra.mxu0 %v1647_v20 }
 0x51d   :  { %v1453_v16 = vpack.c.bf16 %v1449_v45, %v1448_v19  ;;  %2345 = vmatprep.subr.bf16.mxu0 %v2554_v18 }
 0x51f   :  { %2330 = vmatmul.mubr.msk.bf16.vlgmr.msra.gmra.mrb[32].mxu1 %vm1361_vm5, %v1453_v16 }
 0x520   :  { %2341 = vmatprep.mubr.msk.bf16.mxu1 %vm2555_vm1, %v2554_v18  ;;  %2340 = vmatpush3.bf16.msra.mxu1 %v1694_v0  ;;  %v2420_v0 = vld [vmem:[%s3359_s12] sm:$0xff]  }
 0x521   :  { %2351 = vmatprep.subr.bf16.mxu1 %v2554_v18 }
 0x5e3   :  { %v1495_v21 = vpop.f32.mrb[36].mxu0 }
 0x5e4   :  { %v2313_v50 = vpop.f32.mrb[37].mxu0 }
 0x5e5   :  { %v1498_v55 = vpop.f32.mrb[38].mxu0  ;;  %v2423_v50 = vld [vmem:[%s3359_s12 + $0x18] sm:$0xff]  }
 0x5e6   :  { %v1634_v7 = vpack.c.bf16 %v1498_v55, %v1495_v21  ;;  %v2314_v58 = vpop.f32.mrb[39].mxu0  ;;  %v2421_v21 = vld [vmem:[%s3359_s12 + $0x8] sm:$0xff]   ;;  %v2424_v55 = vld [vmem:[%s3359_s12 + $0x20] sm:$0xff]  }
 0x5e8   :  { %2336 = vmatmul.mubr.msk.bf16.vlgmr.msra.gmra.mrb[44].mxu0 %vm799_vm2, %v1634_v7  ;;  %v2425_v7 = vld [vmem:[%s3359_s12 + $0x28] sm:$0xff]  }
 0x5e9   :  { %v1539_v5 = vpop.f32.mrb[28].mxu1  ;;  %2346 = vmatpush3.bf16.msra.mxu0 %v1741_v30  ;;  %2347 = vmatprep.mubr.msk.bf16.mxu0 %vm2555_vm1, %v2554_v18 }
 0x5ea   :  { %v2319_v53 = vpop.f32.mrb[29].mxu1  ;;  %2357 = vmatprep.subr.bf16.mxu0 %v2554_v18 }
 0x5eb   :  { %v1542_v22 = vpop.f32.mrb[30].mxu1 }
 0x5ec   :  { %v1635_v56 = vpack.c.bf16 %v1542_v22, %v1539_v5  ;;  %v2320_v57 = vpop.f32.mrb[31].mxu1 }
 0x5ee   :  { %v1583_v48 = vpop.f32.mrb[40].mxu0  ;;  %2342 = vmatmul.mubr.msk.bf16.vlgmr.msra.gmra.mrb[36].mxu1 %vm799_vm2, %v1635_v56 }
 0x5ef   :  { %v2325_v51 = vpop.f32.mrb[41].mxu0  ;;  %2352 = vmatpush3.bf16.msra.mxu1 %v1788_v47  ;;  %2353 = vmatprep.mubr.msk.bf16.mxu1 %vm2555_vm1, %v2554_v18 }
 0x5f0   :  { %v1586_v25 = vpop.f32.mrb[42].mxu0  ;;  %2365 = vmatprep.subr.bf16.mxu1 %v2554_v18 }
 0x5f1   :  { %v1636_v26 = vpack.c.bf16 %v1586_v25, %v1583_v48  ;;  %v2326_v29 = vpop.f32.mrb[43].mxu0  ;;  %v2426_v25 = vld [vmem:[%s3359_s12 + $0x30] sm:$0xff]  }
 0x5f2   :  { %v1627_v32 = vpop.f32.mrb[32].mxu1 }
 0x5f3   :  { %v2331_v33 = vpop.f32.mrb[33].mxu1  ;;  %2348 = vmatmul.mubr.msk.bf16.vlgmr.msra.gmra.mrb[48].mxu0 %vm799_vm2, %v1636_v26  ;;  %v2427_v26 = vld [vmem:[%s3359_s12 + $0x38] sm:$0xff]   ;;  %s2524_s12 = scalar_lea.vmem %s2044_s9, 256 }
 0x5f4   :  { %v1630_v34 = vpop.f32.mrb[34].mxu1  ;;  %2361 = vmatprep.mubr.msk.bf16.mxu0 %vm2555_vm1, %v2554_v18  ;;  %p2525_p10 = scmp.ne.s32.totalorder %s2044_s9, %s2524_s12  ;;  %p2530_p12 = scmp.lt.s32.totalorder %s2524_s12, %s2524_s12 }
 0x5f5   :  { %v1637_v35 = vpack.c.bf16 %v1630_v34, %v1627_v32  ;;  %v2332_v27 = vpop.f32.mrb[35].mxu1 }
 0x5f6   :  { %p2531_p13 = por %p2530_p12, %p2529_p11 }
 0x5f7   :  { %2354 = vmatmul.mubr.msk.bf16.vlgmr.msra.gmra.mrb[40].mxu1 %vm799_vm2, %v1637_v35 }
 0x5f8   :  { %2381 = vmatprep.mubr.msk.bf16.mxu1 %vm2555_vm1, %v2554_v18  ;;  %2366 = vmatpush3.bf16.msra.mxu1 %v2420_v0  ;;  %p2532_p0 = pnand %p2531_p13, %p2525_p10 }
 0x5f9   :  { %2367 = vmatprep.subr.bf16.mxu1 %v2554_v18 }
 0x5fc   :  { %2368 = vmatpush3.bf16.msra.mxu1 %v2421_v21 }
 0x5fd   :  { %2369 = vmatprep.subr.bf16.mxu1 %v2554_v18 }
 0x600   :  { %2370 = vmatpush3.bf16.msra.mxu1 %v2422_v49 }
 0x601   :  { %2371 = vmatprep.subr.bf16.mxu1 %v2554_v18 }
 0x604   :  { %2372 = vmatpush3.bf16.msra.mxu1 %v2423_v50 }
 0x605   :  { %2373 = vmatprep.subr.bf16.mxu1 %v2554_v18 }
 0x608   :  { %2374 = vmatpush3.bf16.msra.mxu1 %v2424_v55 }
 0x609   :  { %2375 = vmatprep.subr.bf16.mxu1 %v2554_v18 }
 0x60c   :  { %2376 = vmatpush3.bf16.msra.mxu1 %v2425_v7 }
 0x60d   :  { %2377 = vmatprep.subr.bf16.mxu1 %v2554_v18 }
 0x610   :  { %2378 = vmatpush3.bf16.msra.mxu1 %v2426_v25 }
 0x611   :  { %2379 = vmatprep.subr.bf16.mxu1 %v2554_v18 }
 0x614   :  { %2380 = vmatpush3.bf16.msra.mxu1 %v2427_v26 }
 0x6bb   :  { %v1683_v62 = vpop.f32.mrb[44].mxu0 }
 0x6bc   :  { %v2337_v4 = vpop.f32.mrb[45].mxu0  ;;  %v1831_v44 = vsel %vm87_vm0, %v1683_v62, 0.0 }
 0x6bd   :  { %v1686_v1 = vpop.f32.mrb[46].mxu0 }
 0x6be   :  { %v2338_v6 = vpop.f32.mrb[47].mxu0  ;;  %v1838_v46 = vsel %vm87_vm0, %v1686_v1, 0.0 }
 0x6c1   :  { %v1730_v41 = vpop.f32.mrb[36].mxu1 }
 0x6c2   :  { %v1832_v52 = vsel %vm87_vm0, %v1730_v41, 0.0  ;;  %v2343_v54 = vpop.f32.mrb[37].mxu1 }
 0x6c3   :  { %v1833_v43 = vadd.f32 %v1832_v52, %v1831_v44  ;;  %v1733_v60 = vpop.f32.mrb[38].mxu1 }
 0x6c4   :  { %v1839_v13 = vsel %vm87_vm0, %v1733_v60, 0.0  ;;  %v2344_v61 = vpop.f32.mrb[39].mxu1 }
 0x6c5   :  { %v1840_v39 = vadd.f32 %v1839_v13, %v1838_v46 }
 0x6c6   :  { %v1777_v17 = vpop.f32.mrb[48].mxu0 }
 0x6c7   :  { %v1834_v63 = vsel %vm87_vm0, %v1777_v17, 0.0  ;;  %v2349_v24 = vpop.f32.mrb[49].mxu0 }
 0x6c8   :  { %v1835_v3 = vadd.f32 %v1834_v63, %v1833_v43  ;;  %v1780_v12 = vpop.f32.mrb[50].mxu0 }
 0x6c9   :  { %v1841_v36 = vsel %vm87_vm0, %v1780_v12, 0.0  ;;  %v2350_v2 = vpop.f32.mrb[51].mxu0 }
 0x6ca   :  { %v1842_v23 = vadd.f32 %v1841_v36, %v1840_v39  ;;  %v1824_v31 = vpop.f32.mrb[40].mxu1 }
 0x6cb   :  { %v1836_v38 = vsel %vm87_vm0, %v1824_v31, 0.0  ;;  %v2355_v37 = vpop.f32.mrb[41].mxu1 }
 0x6cc   :  { %v1837_v40 = vadd.f32 %v1836_v38, %v1835_v3  ;;  %v1827_v42 = vpop.f32.mrb[42].mxu1 }
 0x6cd   :  { %v1843_v8 = vsel %vm87_vm0, %v1827_v42, 0.0  ;;  %v2356_v14 = vpop.f32.mrb[43].mxu1 }
 0x6ce   :  { %v3279_v15 = vadd.f32 %v1837_v40, %v2649_v10  ;;  %v1844_v19 = vadd.f32 %v1843_v8, %v1842_v23  ;;  %v2418_v10 = vld [vmem:[%s3358_s11] sm:$0xff]  }
 0x6cf   :  { %2358 = vmatpush3.bf16.msra.mxu0 %v2418_v10 }
 0x6d0   :  { %v3282_v45 = vadd.f32 %v1844_v19, %v2651_v11  ;;  %v1847_v16 = vmul.f32 %v3279_v15, %v3279_v15  ;;  %2359 = vmatprep.subr.bf16.mxu0 %v2554_v18  ;;  %v2419_v11 = vld [vmem:[%s3358_s11 + $0x8] sm:$0xff]  }
 0x6d2   :  { %v1849_v9 = vsel %vm87_vm0, %v1847_v16, 0.0  ;;  %v1848_v20 = vmul.f32 %v3282_v45, %v3282_v45 }
 0x6d3   :  { %1850 = vadd.xlane.f32.xlu0 %v1849_v9  ;;  %2360 = vmatpush3.bf16.msra.mxu0 %v2419_v11 }
 0x6d4   :  { %v1852_v28 = vsel %vm87_vm0, %v1848_v20, 0.0 }
 0x6d5   :  { %1853 = vadd.xlane.f32.xlu1 %v1852_v28 }
 0x760   :  { %v1851_v58 = vpop.xlane.xlu0 %1850 }
 0x761   :  { %v1855_v30 = vmul.f32 0.03125, %v1851_v58 }
 0x762   :  { %v1854_v5 = vpop.xlane.xlu1 %1853 }
 0x763   :  { %v1857_v59 = vadd.f32 1.1920929e-07, %v1855_v30  ;;  %v1856_v53 = vmul.f32 0.03125, %v1854_v5 }
 0x765   :  { %2496 = vrsqrt.f32 %v1857_v59  ;;  %v1858_v22 = vadd.f32 1.1920929e-07, %v1856_v53 }
 0x767   :  { %2498 = vrsqrt.f32 %v1858_v22 }
 0x76f   :  { %v2497_v56 = vpop.eup %2496 }
 0x770   :  { %v1861_v47 = vmul.f32 %v2497_v56, %v3279_v15 }
 0x771   :  { %v2499_v57 = vpop.eup %2498 }
 0x772   :  { %v1862_v48 = vmul.f32 %v2499_v57, %v3282_v45 }
 0x774   :  { %v1863_v51 = vpack.c.bf16 %v1862_v48, %v1861_v47 }
 0x776   :  { %2362 = vmatmul.mubr.msk.bf16.vlgmr.msra.gmra.mrb[52].mxu0 %vm87_vm0, %v1863_v51 }
 0x849   :  { %v1917_v29 = vpop.f32.mrb[52].mxu0 }
 0x84a   :  { %v1924_v32 = vmax.f32 %v1917_v29, 0.0  ;;  %v2363_v33 = vpop.f32.mrb[53].mxu0 }
 0x84b   :  { %v1920_v34 = vpop.f32.mrb[54].mxu0 }
 0x84c   :  { %v1925_v35 = vmax.f32 %v1920_v34, 0.0  ;;  %v2364_v27 = vpop.f32.mrb[55].mxu0  ;;  %v1926_v62 = vmul.f32 %v1924_v32, %v1924_v32 }
 0x84e   :  { %v1927_v4 = vmul.f32 %v1925_v35, %v1925_v35 }
 0x850   :  { %v1928_v1 = vpack.c.bf16 %v1927_v4, %v1926_v62 }
 0x852   :  { %2382 = vmatmul.mubr.bf16.vlgmr.msra.gmra.mrb[44].mxu1 %v1928_v1 }
 0x925   :  { %v2027_v6 = vpop.f32.mrb[44].mxu1 }
 0x926   :  { %v2034_v18 = vadd.f32 %v2027_v6, %v3279_v15  ;;  %v2383_v41 = vpop.f32.mrb[45].mxu1 }
 0x927   :  { %v2030_v44 = vpop.f32.mrb[46].mxu1 }
 0x928   :  { %2036 = vst.msk [vmem:[#allocation7] sm:$0xff] %vm87_vm0, %v2034_v18  ;;  %v2035_v52 = vadd.f32 %v2030_v44, %v3282_v45  ;;  %v2384_v54 = vpop.f32.mrb[47].mxu1 }
 0x92a   :  { %2037 = vst.msk [vmem:[#allocation7 + $0x8] sm:$0xff] %vm87_vm0, %v2035_v52 }
 0x92b   :  { %2535 = shalt.err (!%p2532_p0)
}
 0x92c   :  { %s2536_s30 = scalar_lea.hbm %s3360_s13, 256 }
 0x92d   :  { %p2537_p1 = scmp.ne.s32.totalorder %s3360_s13, %s2536_s30  ;;  %p2540_p2 = scmp.lt.u32.totalorder %s2536_s30, %s3360_s13 }
 0x92f   :  { %p2542_p3 = pnand %p2540_p2, %p2537_p1 }
 0x931   :  { %2545 = shalt.err (!%p2542_p3)
}
 0x932   :  { %s2559_s8 = smov 128   ;;  %s2560_s1 = smov 8  }
 0x933   :  { %2049 = dma.vmem_to_hbm [thread:$0]  %s2044_s9, 256, %s3360_s13, [#allocation3], %s2559_s8, %s2559_s8, %s2560_s1  }
 0x934   :  { %2550 = dma.done.wait [#allocation3], 256  }
 0x935   :  { %2551 = vsyncadd [#allocation3], 4294967040 }
 0x936   :  { %2053 = vsyncpa [#allocation3], 1 }
 0x937   :  { %2054 = vsyncpa [#allocation4], 1 }
 0x938   :  { %2055 = vsyncpa [#allocation6], 1 }

</bundles_post_ra>
